<compile_context>
chip_gen: v7x
topology: tpu7x:2x2x1
jax: 0.10.0
libtpu: 0.0.40
codegen_flags: <defaults>
</compile_context>

<pallas_src>
import math
import functools

import jax
import jax.numpy as jnp
from jax import lax
from jax.experimental import pallas as pl
from jax.experimental.pallas import tpu as pltpu


# ----------------------------------------------------------------------------
# In-kernel helpers
# ----------------------------------------------------------------------------
def _erf(z):
    # Abramowitz & Stegun 7.1.26 polynomial (max abs err ~1.5e-7, i.e. f32
    # precision). Avoids relying on a lax.erf lowering in Mosaic.
    s = jnp.where(z >= 0.0, 1.0, -1.0)
    a = jnp.abs(z)
    t = 1.0 / (1.0 + 0.3275911 * a)
    poly = t * (0.254829592
                + t * (-0.284496736
                       + t * (1.421413741
                              + t * (-1.453152027
                                     + t * 1.061405429))))
    return s * (1.0 - poly * jnp.exp(-a * a))


def _gelu_exact(x):
    # nn.GELU() default (erf-based, approximate='none')
    return 0.5 * x * (1.0 + _erf(x * 0.7071067811865476))


def _layernorm(v, g, b, eps=1e-5):
    mu = jnp.mean(v, axis=-1, keepdims=True)
    c = v - mu
    var = jnp.mean(c * c, axis=-1, keepdims=True)
    return c * lax.rsqrt(var + eps) * g + b


# ----------------------------------------------------------------------------
# Fused Transformer encoder layer kernel
#   processes `BB` batch elements per grid step:
#     x = x + MHSA(LN1(x)) ; x = x + MLP(LN2(x))
# ----------------------------------------------------------------------------
def transformer_encoder_kernel(x_ref,
                               ln1_g_ref, ln1_b_ref,
                               wq_ref, bq_ref, wk_ref, bk_ref, wv_ref, bv_ref,
                               wp_ref, bp_ref,
                               ln2_g_ref, ln2_b_ref,
                               w1_ref, b1_ref, w2_ref, b2_ref,
                               out_ref,
                               *, num_heads, compute_dtype):
    BB, T, D = x_ref.shape
    H = num_heads
    Dh = D // H

    def mm(a, w_ref, b_ref):
        # Matmul with f32 accumulation; operands optionally cast (bf16 path).
        return (jnp.dot(a.astype(compute_dtype),
                        w_ref[...].astype(compute_dtype),
                        preferred_element_type=jnp.float32)
                + b_ref[...])

    # Fold batch into the matmul M dimension for all row-wise ops.
    x = x_ref[...].reshape(BB * T, D)                      # [BB*T, D]

    # --- MHSA branch --------------------------------------------------------
    h1 = _layernorm(x, ln1_g_ref[...], ln1_b_ref[...])
    q = mm(h1, wq_ref, bq_ref)
    k = mm(h1, wk_ref, bk_ref)
    v = mm(h1, wv_ref, bv_ref)

    def split_heads(t):                                    # -> [H*BB, T, Dh]
        t = t.reshape(BB, T, D)
        heads = [t[:, :, h * Dh:(h + 1) * Dh] for h in range(H)]
        return jnp.stack(heads, axis=0).reshape(H * BB, T, Dh)

    qh, kh, vh = split_heads(q), split_heads(k), split_heads(v)

    scale = 1.0 / math.sqrt(Dh)
    # One head-batched contraction for scores (batch dim = H*BB).
    s = jnp.einsum("btd,bsd->bts",
                   qh.astype(compute_dtype), kh.astype(compute_dtype),
                   preferred_element_type=jnp.float32) * scale
    s = s - jnp.max(s, axis=-1, keepdims=True)
    e = jnp.exp(s)
    p = e * pl.reciprocal(jnp.sum(e, axis=-1, keepdims=True), approx=True)
    # One head-batched contraction for p @ v.
    o = jnp.einsum("bts,bsd->btd",
                   p.astype(compute_dtype), vh.astype(compute_dtype),
                   preferred_element_type=jnp.float32)     # [H*BB, T, Dh]

    # Merge heads back to lane-packed [BB*T, D] (lane-dense for real ViT dims).
    o = o.reshape(H, BB, T, Dh)
    o = jnp.concatenate([o[h] for h in range(H)], axis=-1)  # [BB, T, D]
    o = o.reshape(BB * T, D)

    x = x + mm(o, wp_ref, bp_ref)     # attn_drop / proj_drop: identity (eval)

    # --- MLP branch ---------------------------------------------------------
    h2 = _layernorm(x, ln2_g_ref[...], ln2_b_ref[...])
    m = mm(h2, w1_ref, b1_ref)
    m = _gelu_exact(m)
    m = mm(m, w2_ref, b2_ref)

    out_ref[...] = (x + m).reshape(BB, T, D)               # dropout: identity


def transformer_encoder(x, params, num_heads, *, batch_block=None,
                        compute_dtype=jnp.float32):
    B, T, D = x.shape
    assert D % num_heads == 0

    if batch_block is None:
        # Fold as many batch elements as possible into the MXU M dimension
        # (target ~128 rows) while keeping a batch-block grid axis available
        # for megacore sharding at larger B.
        target = max(1, 128 // max(T, 1))
        batch_block = 1
        for cand in range(1, B + 1):
            if B % cand == 0 and cand <= target:
                batch_block = cand
    assert B % batch_block == 0
    num_blocks = B // batch_block

    names = ["ln1_g", "ln1_b", "wq", "bq", "wk", "bk", "wv", "bv",
             "wp", "bp", "ln2_g", "ln2_b", "w1", "b1", "w2", "b2"]
    weights = [params[n] for n in names]

    in_specs = [pl.BlockSpec((batch_block, T, D), lambda i: (i, 0, 0))]
    for w in weights:
        in_specs.append(pl.BlockSpec(w.shape, lambda i, _n=w.ndim: (0,) * _n))

    kernel = functools.partial(transformer_encoder_kernel,
                               num_heads=num_heads,
                               compute_dtype=compute_dtype)
    return pl.pallas_call(
        kernel,
        out_shape=jax.ShapeDtypeStruct((B, T, D), jnp.float32),
        grid=(num_blocks,),
        in_specs=in_specs,
        out_specs=pl.BlockSpec((batch_block, T, D), lambda i: (i, 0, 0)),
        compiler_params=pltpu.CompilerParams(
            dimension_semantics=("parallel",),
            vmem_limit_bytes=32 * 1024 * 1024),
    )(x, *weights)


# ----------------------------------------------------------------------------
# Parameters (deterministic, synthetic, torch-default-style init)
# Linear weights are stored transposed ([in, out]) so kernels compute x @ W + b.
# ----------------------------------------------------------------------------
def init_params(key, *, embed_dim, mlp_dim):
    keys = iter(jax.random.split(key, 12))

    def linear(fan_in, fan_out):
        bound = 1.0 / math.sqrt(fan_in)
        w = jax.random.uniform(next(keys), (fan_in, fan_out), jnp.float32,
                               -bound, bound)
        b = jax.random.uniform(next(keys), (1, fan_out), jnp.float32,
                               -bound, bound)
        return w, b

    p = {}
    p["ln1_g"] = jnp.ones((1, embed_dim), jnp.float32)
    p["ln1_b"] = jnp.zeros((1, embed_dim), jnp.float32)
    p["wq"], p["bq"] = linear(embed_dim, embed_dim)
    p["wk"], p["bk"] = linear(embed_dim, embed_dim)
    p["wv"], p["bv"] = linear(embed_dim, embed_dim)
    p["wp"], p["bp"] = linear(embed_dim, embed_dim)
    p["ln2_g"] = jnp.ones((1, embed_dim), jnp.float32)
    p["ln2_b"] = jnp.zeros((1, embed_dim), jnp.float32)
    p["w1"], p["b1"] = linear(embed_dim, mlp_dim)
    p["w2"], p["b2"] = linear(mlp_dim, embed_dim)
    return p


# ----------------------------------------------------------------------------
# Pure-JAX reference (sanity check only)
# ----------------------------------------------------------------------------
def transformer_encoder_ref(x, p, num_heads):
    def ln(v, g, b):
        mu = v.mean(-1, keepdims=True)
        var = ((v - mu) ** 2).mean(-1, keepdims=True)
        return (v - mu) / jnp.sqrt(var + 1e-5) * g + b

    B, T, D = x.shape
    Dh = D // num_heads
    h1 = ln(x, p["ln1_g"], p["ln1_b"])
    q = h1 @ p["wq"] + p["bq"]
    k = h1 @ p["wk"] + p["bk"]
    v = h1 @ p["wv"] + p["bv"]
    qh = q.reshape(B, T, num_heads, Dh).transpose(0, 2, 1, 3)
    kh = k.reshape(B, T, num_heads, Dh).transpose(0, 2, 1, 3)
    vh = v.reshape(B, T, num_heads, Dh).transpose(0, 2, 1, 3)
    w = jnp.einsum("bhtd,bhsd->bhts", qh, kh) / math.sqrt(Dh)
    w = jax.nn.softmax(w, axis=-1)
    a = jnp.einsum("bhts,bhsd->bhtd", w, vh).transpose(0, 2, 1, 3)
    a = a.reshape(B, T, D)
    x = x + (a @ p["wp"] + p["bp"])
    h2 = ln(x, p["ln2_g"], p["ln2_b"])
    m = jax.nn.gelu(h2 @ p["w1"] + p["b1"], approximate=False)
    return x + (m @ p["w2"] + p["b2"])


# ----------------------------------------------------------------------------
if __name__ == "__main__":
    cfg = dict(num_heads=4, embed_dim=32, mlp_dim=64, drop_p=0.0)
    B, T = 2, 8

    key = jax.random.PRNGKey(0)
    k_params, k_x = jax.random.split(key)
    params = init_params(k_params, embed_dim=cfg["embed_dim"],
                         mlp_dim=cfg["mlp_dim"])
    x = jax.random.normal(k_x, (B, T, cfg["embed_dim"]), jnp.float32)

    out = transformer_encoder(x, params, cfg["num_heads"])
    out = jax.block_until_ready(out)
    assert out.shape == (B, T, cfg["embed_dim"])

    ref = jax.block_until_ready(
        transformer_encoder_ref(x, params, cfg["num_heads"]))
    max_err = float(jnp.max(jnp.abs(out - ref)))
    assert max_err < 2e-2, f"mismatch vs reference: {max_err}"

    print("KERNEL_OK")
</pallas_src>

<mosaic_0001>
module attributes {stable_mosaic.version = 11 : i64} {
  func.func @transformer_encoder_kernel(%arg0: i32, %arg1: memref<2x8x32xf32, #tpu.memory_space<vmem>>, %arg2: memref<1x32xf32, #tpu.memory_space<vmem>>, %arg3: memref<1x32xf32, #tpu.memory_space<vmem>>, %arg4: memref<32x32xf32, #tpu.memory_space<vmem>>, %arg5: memref<1x32xf32, #tpu.memory_space<vmem>>, %arg6: memref<32x32xf32, #tpu.memory_space<vmem>>, %arg7: memref<1x32xf32, #tpu.memory_space<vmem>>, %arg8: memref<32x32xf32, #tpu.memory_space<vmem>>, %arg9: memref<1x32xf32, #tpu.memory_space<vmem>>, %arg10: memref<32x32xf32, #tpu.memory_space<vmem>>, %arg11: memref<1x32xf32, #tpu.memory_space<vmem>>, %arg12: memref<1x32xf32, #tpu.memory_space<vmem>>, %arg13: memref<1x32xf32, #tpu.memory_space<vmem>>, %arg14: memref<32x64xf32, #tpu.memory_space<vmem>>, %arg15: memref<1x64xf32, #tpu.memory_space<vmem>>, %arg16: memref<64x32xf32, #tpu.memory_space<vmem>>, %arg17: memref<1x32xf32, #tpu.memory_space<vmem>>, %arg18: memref<2x8x32xf32, #tpu.memory_space<vmem>>) attributes {dimension_semantics = [#tpu.dimension_semantics<parallel>], iteration_bounds = array<i64: 1>, scalar_prefetch = 0 : i64, scratch_operands = 0 : i64, tpu.core_type = #tpu.core_type<tc>, window_params = [{transform_indices = @transform_0, window_bounds = array<i64: 2, 8, 32>}, {pipeline_mode = #tpu.pipeline_mode<synchronous>, transform_indices = @transform_1, window_bounds = array<i64: 1, 32>}, {pipeline_mode = #tpu.pipeline_mode<synchronous>, transform_indices = @transform_2, window_bounds = array<i64: 1, 32>}, {pipeline_mode = #tpu.pipeline_mode<synchronous>, transform_indices = @transform_3, window_bounds = array<i64: 32, 32>}, {pipeline_mode = #tpu.pipeline_mode<synchronous>, transform_indices = @transform_4, window_bounds = array<i64: 1, 32>}, {pipeline_mode = #tpu.pipeline_mode<synchronous>, transform_indices = @transform_5, window_bounds = array<i64: 32, 32>}, {pipeline_mode = #tpu.pipeline_mode<synchronous>, transform_indices = @transform_6, window_bounds = array<i64: 1, 32>}, {pipeline_mode = #tpu.pipeline_mode<synchronous>, transform_indices = @transform_7, window_bounds = array<i64: 32, 32>}, {pipeline_mode = #tpu.pipeline_mode<synchronous>, transform_indices = @transform_8, window_bounds = array<i64: 1, 32>}, {pipeline_mode = #tpu.pipeline_mode<synchronous>, transform_indices = @transform_9, window_bounds = array<i64: 32, 32>}, {pipeline_mode = #tpu.pipeline_mode<synchronous>, transform_indices = @transform_10, window_bounds = array<i64: 1, 32>}, {pipeline_mode = #tpu.pipeline_mode<synchronous>, transform_indices = @transform_11, window_bounds = array<i64: 1, 32>}, {pipeline_mode = #tpu.pipeline_mode<synchronous>, transform_indices = @transform_12, window_bounds = array<i64: 1, 32>}, {pipeline_mode = #tpu.pipeline_mode<synchronous>, transform_indices = @transform_13, window_bounds = array<i64: 32, 64>}, {pipeline_mode = #tpu.pipeline_mode<synchronous>, transform_indices = @transform_14, window_bounds = array<i64: 1, 64>}, {pipeline_mode = #tpu.pipeline_mode<synchronous>, transform_indices = @transform_15, window_bounds = array<i64: 64, 32>}, {pipeline_mode = #tpu.pipeline_mode<synchronous>, transform_indices = @transform_16, window_bounds = array<i64: 1, 32>}, {transform_indices = @transform_17, window_bounds = array<i64: 2, 8, 32>}]} {
    %c0 = arith.constant 0 : index
    %c0_0 = arith.constant 0 : index
    %c0_1 = arith.constant 0 : index
    %0 = vector.load %arg1[%c0, %c0_0, %c0_1] : memref<2x8x32xf32, #tpu.memory_space<vmem>>, vector<2x8x32xf32>
    %1 = vector.shape_cast %0 : vector<2x8x32xf32> to vector<16x32xf32>
    %c0_2 = arith.constant 0 : index
    %c0_3 = arith.constant 0 : index
    %2 = vector.load %arg2[%c0_2, %c0_3] : memref<1x32xf32, #tpu.memory_space<vmem>>, vector<1x32xf32>
    %c0_4 = arith.constant 0 : index
    %c0_5 = arith.constant 0 : index
    %3 = vector.load %arg3[%c0_4, %c0_5] : memref<1x32xf32, #tpu.memory_space<vmem>>, vector<1x32xf32>
    %cst = arith.constant dense<0.000000e+00> : vector<16xf32>
    %4 = vector.multi_reduction <add>, %1, %cst [1] : vector<16x32xf32> to vector<16xf32>
    %5 = vector.shape_cast %4 : vector<16xf32> to vector<16x1xf32>
    %cst_6 = arith.constant 3.200000e+01 : f32
    %6 = vector.broadcast %cst_6 : f32 to vector<16x1xf32>
    %7 = arith.divf %5, %6 : vector<16x1xf32>
    %8 = vector.broadcast %7 : vector<16x1xf32> to vector<16x32xf32>
    %9 = arith.subf %1, %8 : vector<16x32xf32>
    %10 = arith.mulf %9, %9 : vector<16x32xf32>
    %cst_7 = arith.constant dense<0.000000e+00> : vector<16xf32>
    %11 = vector.multi_reduction <add>, %10, %cst_7 [1] : vector<16x32xf32> to vector<16xf32>
    %12 = vector.shape_cast %11 : vector<16xf32> to vector<16x1xf32>
    %cst_8 = arith.constant 3.200000e+01 : f32
    %13 = vector.broadcast %cst_8 : f32 to vector<16x1xf32>
    %14 = arith.divf %12, %13 : vector<16x1xf32>
    %cst_9 = arith.constant 9.99999974E-6 : f32
    %15 = vector.broadcast %cst_9 : f32 to vector<16x1xf32>
    %16 = arith.addf %14, %15 : vector<16x1xf32>
    %17 = math.rsqrt %16 : vector<16x1xf32>
    %18 = vector.broadcast %17 : vector<16x1xf32> to vector<16x32xf32>
    %19 = arith.mulf %9, %18 : vector<16x32xf32>
    %20 = vector.broadcast %2 : vector<1x32xf32> to vector<16x32xf32>
    %21 = arith.mulf %19, %20 : vector<16x32xf32>
    %22 = vector.broadcast %3 : vector<1x32xf32> to vector<16x32xf32>
    %23 = arith.addf %21, %22 : vector<16x32xf32>
    %c0_10 = arith.constant 0 : index
    %c0_11 = arith.constant 0 : index
    %24 = vector.load %arg4[%c0_10, %c0_11] : memref<32x32xf32, #tpu.memory_space<vmem>>, vector<32x32xf32>
    %cst_12 = arith.constant dense<0.000000e+00> : vector<16x32xf32>
    %25 = tpu.matmul %23, %24, %cst_12 {dimension_numbers = #tpu.dot_dimension_numbers<[1], [0], [0], [1], [0, 0, 1, 1], [], []>} : vector<16x32xf32>, vector<32x32xf32>, vector<16x32xf32> -> vector<16x32xf32>
    %c0_13 = arith.constant 0 : index
    %c0_14 = arith.constant 0 : index
    %26 = vector.load %arg5[%c0_13, %c0_14] : memref<1x32xf32, #tpu.memory_space<vmem>>, vector<1x32xf32>
    %27 = vector.broadcast %26 : vector<1x32xf32> to vector<16x32xf32>
    %28 = arith.addf %25, %27 : vector<16x32xf32>
    %c0_15 = arith.constant 0 : index
    %c0_16 = arith.constant 0 : index
    %29 = vector.load %arg6[%c0_15, %c0_16] : memref<32x32xf32, #tpu.memory_space<vmem>>, vector<32x32xf32>
    %cst_17 = arith.constant dense<0.000000e+00> : vector<16x32xf32>
    %30 = tpu.matmul %23, %29, %cst_17 {dimension_numbers = #tpu.dot_dimension_numbers<[1], [0], [0], [1], [0, 0, 1, 1], [], []>} : vector<16x32xf32>, vector<32x32xf32>, vector<16x32xf32> -> vector<16x32xf32>
    %c0_18 = arith.constant 0 : index
    %c0_19 = arith.constant 0 : index
    %31 = vector.load %arg7[%c0_18, %c0_19] : memref<1x32xf32, #tpu.memory_space<vmem>>, vector<1x32xf32>
    %32 = vector.broadcast %31 : vector<1x32xf32> to vector<16x32xf32>
    %33 = arith.addf %30, %32 : vector<16x32xf32>
    %c0_20 = arith.constant 0 : index
    %c0_21 = arith.constant 0 : index
    %34 = vector.load %arg8[%c0_20, %c0_21] : memref<32x32xf32, #tpu.memory_space<vmem>>, vector<32x32xf32>
    %cst_22 = arith.constant dense<0.000000e+00> : vector<16x32xf32>
    %35 = tpu.matmul %23, %34, %cst_22 {dimension_numbers = #tpu.dot_dimension_numbers<[1], [0], [0], [1], [0, 0, 1, 1], [], []>} : vector<16x32xf32>, vector<32x32xf32>, vector<16x32xf32> -> vector<16x32xf32>
    %c0_23 = arith.constant 0 : index
    %c0_24 = arith.constant 0 : index
    %36 = vector.load %arg9[%c0_23, %c0_24] : memref<1x32xf32, #tpu.memory_space<vmem>>, vector<1x32xf32>
    %37 = vector.broadcast %36 : vector<1x32xf32> to vector<16x32xf32>
    %38 = arith.addf %35, %37 : vector<16x32xf32>
    %39 = vector.shape_cast %28 : vector<16x32xf32> to vector<2x8x32xf32>
    %40 = vector.extract_strided_slice %39 {offsets = [0, 0, 0], sizes = [2, 8, 8], strides = [1, 1, 1]} : vector<2x8x32xf32> to vector<2x8x8xf32>
    %41 = vector.extract_strided_slice %39 {offsets = [0, 0, 8], sizes = [2, 8, 8], strides = [1, 1, 1]} : vector<2x8x32xf32> to vector<2x8x8xf32>
    %42 = vector.extract_strided_slice %39 {offsets = [0, 0, 16], sizes = [2, 8, 8], strides = [1, 1, 1]} : vector<2x8x32xf32> to vector<2x8x8xf32>
    %43 = vector.extract_strided_slice %39 {offsets = [0, 0, 24], sizes = [2, 8, 8], strides = [1, 1, 1]} : vector<2x8x32xf32> to vector<2x8x8xf32>
    %44 = vector.shape_cast %40 : vector<2x8x8xf32> to vector<1x2x8x8xf32>
    %45 = vector.shape_cast %41 : vector<2x8x8xf32> to vector<1x2x8x8xf32>
    %46 = vector.shape_cast %42 : vector<2x8x8xf32> to vector<1x2x8x8xf32>
    %47 = vector.shape_cast %43 : vector<2x8x8xf32> to vector<1x2x8x8xf32>
    %48 = tpu.concatenate %44, %45, %46, %47 in 0 : vector<1x2x8x8xf32>, vector<1x2x8x8xf32>, vector<1x2x8x8xf32>, vector<1x2x8x8xf32> -> vector<4x2x8x8xf32>
    %49 = vector.shape_cast %48 : vector<4x2x8x8xf32> to vector<8x8x8xf32>
    %50 = vector.shape_cast %33 : vector<16x32xf32> to vector<2x8x32xf32>
    %51 = vector.extract_strided_slice %50 {offsets = [0, 0, 0], sizes = [2, 8, 8], strides = [1, 1, 1]} : vector<2x8x32xf32> to vector<2x8x8xf32>
    %52 = vector.extract_strided_slice %50 {offsets = [0, 0, 8], sizes = [2, 8, 8], strides = [1, 1, 1]} : vector<2x8x32xf32> to vector<2x8x8xf32>
    %53 = vector.extract_strided_slice %50 {offsets = [0, 0, 16], sizes = [2, 8, 8], strides = [1, 1, 1]} : vector<2x8x32xf32> to vector<2x8x8xf32>
    %54 = vector.extract_strided_slice %50 {offsets = [0, 0, 24], sizes = [2, 8, 8], strides = [1, 1, 1]} : vector<2x8x32xf32> to vector<2x8x8xf32>
    %55 = vector.shape_cast %51 : vector<2x8x8xf32> to vector<1x2x8x8xf32>
    %56 = vector.shape_cast %52 : vector<2x8x8xf32> to vector<1x2x8x8xf32>
    %57 = vector.shape_cast %53 : vector<2x8x8xf32> to vector<1x2x8x8xf32>
    %58 = vector.shape_cast %54 : vector<2x8x8xf32> to vector<1x2x8x8xf32>
    %59 = tpu.concatenate %55, %56, %57, %58 in 0 : vector<1x2x8x8xf32>, vector<1x2x8x8xf32>, vector<1x2x8x8xf32>, vector<1x2x8x8xf32> -> vector<4x2x8x8xf32>
    %60 = vector.shape_cast %59 : vector<4x2x8x8xf32> to vector<8x8x8xf32>
    %61 = vector.shape_cast %38 : vector<16x32xf32> to vector<2x8x32xf32>
    %62 = vector.extract_strided_slice %61 {offsets = [0, 0, 0], sizes = [2, 8, 8], strides = [1, 1, 1]} : vector<2x8x32xf32> to vector<2x8x8xf32>
    %63 = vector.extract_strided_slice %61 {offsets = [0, 0, 8], sizes = [2, 8, 8], strides = [1, 1, 1]} : vector<2x8x32xf32> to vector<2x8x8xf32>
    %64 = vector.extract_strided_slice %61 {offsets = [0, 0, 16], sizes = [2, 8, 8], strides = [1, 1, 1]} : vector<2x8x32xf32> to vector<2x8x8xf32>
    %65 = vector.extract_strided_slice %61 {offsets = [0, 0, 24], sizes = [2, 8, 8], strides = [1, 1, 1]} : vector<2x8x32xf32> to vector<2x8x8xf32>
    %66 = vector.shape_cast %62 : vector<2x8x8xf32> to vector<1x2x8x8xf32>
    %67 = vector.shape_cast %63 : vector<2x8x8xf32> to vector<1x2x8x8xf32>
    %68 = vector.shape_cast %64 : vector<2x8x8xf32> to vector<1x2x8x8xf32>
    %69 = vector.shape_cast %65 : vector<2x8x8xf32> to vector<1x2x8x8xf32>
    %70 = tpu.concatenate %66, %67, %68, %69 in 0 : vector<1x2x8x8xf32>, vector<1x2x8x8xf32>, vector<1x2x8x8xf32>, vector<1x2x8x8xf32> -> vector<4x2x8x8xf32>
    %71 = vector.shape_cast %70 : vector<4x2x8x8xf32> to vector<8x8x8xf32>
    "tpu.trace_start"() <{level = 10 : i32, message = "btd,bsd->bts"}> : () -> ()
    %cst_25 = arith.constant dense<0.000000e+00> : vector<8x8x8xf32>
    %72 = tpu.matmul %49, %60, %cst_25 {dimension_numbers = #tpu.dot_dimension_numbers<[2], [2], [1], [1], [0, 0, 0, 1, 1, 1], [0], [0]>} : vector<8x8x8xf32>, vector<8x8x8xf32>, vector<8x8x8xf32> -> vector<8x8x8xf32>
    "tpu.trace_stop"() : () -> ()
    %cst_26 = arith.constant 0.353553385 : f32
    %73 = vector.broadcast %cst_26 : f32 to vector<8x8x8xf32>
    %74 = arith.mulf %72, %73 : vector<8x8x8xf32>
    %cst_27 = arith.constant dense<0xFF800000> : vector<8x8xf32>
    %75 = vector.multi_reduction <maximumf>, %74, %cst_27 [2] : vector<8x8x8xf32> to vector<8x8xf32>
    %76 = vector.shape_cast %75 : vector<8x8xf32> to vector<8x8x1xf32>
    %77 = vector.broadcast %76 : vector<8x8x1xf32> to vector<8x8x8xf32>
    %78 = arith.subf %74, %77 : vector<8x8x8xf32>
    %79 = math.exp %78 : vector<8x8x8xf32>
    %cst_28 = arith.constant dense<0.000000e+00> : vector<8x8xf32>
    %80 = vector.multi_reduction <add>, %79, %cst_28 [2] : vector<8x8x8xf32> to vector<8x8xf32>
    %81 = vector.shape_cast %80 : vector<8x8xf32> to vector<8x8x1xf32>
    %82 = tpu.reciprocal %81 {approx = true} : vector<8x8x1xf32> -> vector<8x8x1xf32>
    %83 = vector.broadcast %82 : vector<8x8x1xf32> to vector<8x8x8xf32>
    %84 = arith.mulf %79, %83 : vector<8x8x8xf32>
    "tpu.trace_start"() <{level = 10 : i32, message = "bts,bsd->btd"}> : () -> ()
    %cst_29 = arith.constant dense<0.000000e+00> : vector<8x8x8xf32>
    %85 = tpu.matmul %84, %71, %cst_29 {dimension_numbers = #tpu.dot_dimension_numbers<[2], [1], [1], [2], [0, 0, 0, 1, 1, 2], [0], [0]>} : vector<8x8x8xf32>, vector<8x8x8xf32>, vector<8x8x8xf32> -> vector<8x8x8xf32>
    "tpu.trace_stop"() : () -> ()
    %86 = vector.shape_cast %85 : vector<8x8x8xf32> to vector<4x2x8x8xf32>
    %87 = vector.extract_strided_slice %86 {offsets = [0, 0, 0, 0], sizes = [1, 2, 8, 8], strides = [1, 1, 1, 1]} : vector<4x2x8x8xf32> to vector<1x2x8x8xf32>
    %88 = vector.shape_cast %87 : vector<1x2x8x8xf32> to vector<2x8x8xf32>
    %89 = vector.extract_strided_slice %86 {offsets = [1, 0, 0, 0], sizes = [1, 2, 8, 8], strides = [1, 1, 1, 1]} : vector<4x2x8x8xf32> to vector<1x2x8x8xf32>
    %90 = vector.shape_cast %89 : vector<1x2x8x8xf32> to vector<2x8x8xf32>
    %91 = vector.extract_strided_slice %86 {offsets = [2, 0, 0, 0], sizes = [1, 2, 8, 8], strides = [1, 1, 1, 1]} : vector<4x2x8x8xf32> to vector<1x2x8x8xf32>
    %92 = vector.shape_cast %91 : vector<1x2x8x8xf32> to vector<2x8x8xf32>
    %93 = vector.extract_strided_slice %86 {offsets = [3, 0, 0, 0], sizes = [1, 2, 8, 8], strides = [1, 1, 1, 1]} : vector<4x2x8x8xf32> to vector<1x2x8x8xf32>
    %94 = vector.shape_cast %93 : vector<1x2x8x8xf32> to vector<2x8x8xf32>
    %95 = tpu.concatenate %88, %90, %92, %94 in 2 : vector<2x8x8xf32>, vector<2x8x8xf32>, vector<2x8x8xf32>, vector<2x8x8xf32> -> vector<2x8x32xf32>
    %96 = vector.shape_cast %95 : vector<2x8x32xf32> to vector<16x32xf32>
    %c0_30 = arith.constant 0 : index
    %c0_31 = arith.constant 0 : index
    %97 = vector.load %arg10[%c0_30, %c0_31] : memref<32x32xf32, #tpu.memory_space<vmem>>, vector<32x32xf32>
    %cst_32 = arith.constant dense<0.000000e+00> : vector<16x32xf32>
    %98 = tpu.matmul %96, %97, %cst_32 {dimension_numbers = #tpu.dot_dimension_numbers<[1], [0], [0], [1], [0, 0, 1, 1], [], []>} : vector<16x32xf32>, vector<32x32xf32>, vector<16x32xf32> -> vector<16x32xf32>
    %c0_33 = arith.constant 0 : index
    %c0_34 = arith.constant 0 : index
    %99 = vector.load %arg11[%c0_33, %c0_34] : memref<1x32xf32, #tpu.memory_space<vmem>>, vector<1x32xf32>
    %100 = vector.broadcast %99 : vector<1x32xf32> to vector<16x32xf32>
    %101 = arith.addf %98, %100 : vector<16x32xf32>
    %102 = arith.addf %1, %101 : vector<16x32xf32>
    %c0_35 = arith.constant 0 : index
    %c0_36 = arith.constant 0 : index
    %103 = vector.load %arg12[%c0_35, %c0_36] : memref<1x32xf32, #tpu.memory_space<vmem>>, vector<1x32xf32>
    %c0_37 = arith.constant 0 : index
    %c0_38 = arith.constant 0 : index
    %104 = vector.load %arg13[%c0_37, %c0_38] : memref<1x32xf32, #tpu.memory_space<vmem>>, vector<1x32xf32>
    %cst_39 = arith.constant dense<0.000000e+00> : vector<16xf32>
    %105 = vector.multi_reduction <add>, %102, %cst_39 [1] : vector<16x32xf32> to vector<16xf32>
    %106 = vector.shape_cast %105 : vector<16xf32> to vector<16x1xf32>
    %cst_40 = arith.constant 3.200000e+01 : f32
    %107 = vector.broadcast %cst_40 : f32 to vector<16x1xf32>
    %108 = arith.divf %106, %107 : vector<16x1xf32>
    %109 = vector.broadcast %108 : vector<16x1xf32> to vector<16x32xf32>
    %110 = arith.subf %102, %109 : vector<16x32xf32>
    %111 = arith.mulf %110, %110 : vector<16x32xf32>
    %cst_41 = arith.constant dense<0.000000e+00> : vector<16xf32>
    %112 = vector.multi_reduction <add>, %111, %cst_41 [1] : vector<16x32xf32> to vector<16xf32>
    %113 = vector.shape_cast %112 : vector<16xf32> to vector<16x1xf32>
    %cst_42 = arith.constant 3.200000e+01 : f32
    %114 = vector.broadcast %cst_42 : f32 to vector<16x1xf32>
    %115 = arith.divf %113, %114 : vector<16x1xf32>
    %cst_43 = arith.constant 9.99999974E-6 : f32
    %116 = vector.broadcast %cst_43 : f32 to vector<16x1xf32>
    %117 = arith.addf %115, %116 : vector<16x1xf32>
    %118 = math.rsqrt %117 : vector<16x1xf32>
    %119 = vector.broadcast %118 : vector<16x1xf32> to vector<16x32xf32>
    %120 = arith.mulf %110, %119 : vector<16x32xf32>
    %121 = vector.broadcast %103 : vector<1x32xf32> to vector<16x32xf32>
    %122 = arith.mulf %120, %121 : vector<16x32xf32>
    %123 = vector.broadcast %104 : vector<1x32xf32> to vector<16x32xf32>
    %124 = arith.addf %122, %123 : vector<16x32xf32>
    %c0_44 = arith.constant 0 : index
    %c0_45 = arith.constant 0 : index
    %125 = vector.load %arg14[%c0_44, %c0_45] : memref<32x64xf32, #tpu.memory_space<vmem>>, vector<32x64xf32>
    %cst_46 = arith.constant dense<0.000000e+00> : vector<16x64xf32>
    %126 = tpu.matmul %124, %125, %cst_46 {dimension_numbers = #tpu.dot_dimension_numbers<[1], [0], [0], [1], [0, 0, 1, 1], [], []>} : vector<16x32xf32>, vector<32x64xf32>, vector<16x64xf32> -> vector<16x64xf32>
    %c0_47 = arith.constant 0 : index
    %c0_48 = arith.constant 0 : index
    %127 = vector.load %arg15[%c0_47, %c0_48] : memref<1x64xf32, #tpu.memory_space<vmem>>, vector<1x64xf32>
    %128 = vector.broadcast %127 : vector<1x64xf32> to vector<16x64xf32>
    %129 = arith.addf %126, %128 : vector<16x64xf32>
    %cst_49 = arith.constant 5.000000e-01 : f32
    %130 = vector.broadcast %cst_49 : f32 to vector<16x64xf32>
    %131 = arith.mulf %130, %129 : vector<16x64xf32>
    %cst_50 = arith.constant 0.707106769 : f32
    %132 = vector.broadcast %cst_50 : f32 to vector<16x64xf32>
    %133 = arith.mulf %129, %132 : vector<16x64xf32>
    %cst_51 = arith.constant 0.000000e+00 : f32
    %134 = vector.broadcast %cst_51 : f32 to vector<16x64xf32>
    %135 = arith.cmpf oge, %133, %134 : vector<16x64xf32>
    %cst_52 = arith.constant 1.000000e+00 : f32
    %cst_53 = arith.constant -1.000000e+00 : f32
    %136 = vector.broadcast %cst_52 : f32 to vector<16x64xf32>
    %137 = vector.broadcast %cst_53 : f32 to vector<16x64xf32>
    %138 = arith.select %135, %136, %137 : vector<16x64xi1>, vector<16x64xf32>
    %139 = math.absf %133 : vector<16x64xf32>
    %cst_54 = arith.constant 0.327591091 : f32
    %140 = vector.broadcast %cst_54 : f32 to vector<16x64xf32>
    %141 = arith.mulf %140, %139 : vector<16x64xf32>
    %cst_55 = arith.constant 1.000000e+00 : f32
    %142 = vector.broadcast %cst_55 : f32 to vector<16x64xf32>
    %143 = arith.addf %142, %141 : vector<16x64xf32>
    %cst_56 = arith.constant 1.000000e+00 : f32
    %144 = vector.broadcast %cst_56 : f32 to vector<16x64xf32>
    %145 = arith.divf %144, %143 : vector<16x64xf32>
    %cst_57 = arith.constant 1.06140542 : f32
    %146 = vector.broadcast %cst_57 : f32 to vector<16x64xf32>
    %147 = arith.mulf %145, %146 : vector<16x64xf32>
    %cst_58 = arith.constant -1.45315206 : f32
    %148 = vector.broadcast %cst_58 : f32 to vector<16x64xf32>
    %149 = arith.addf %148, %147 : vector<16x64xf32>
    %150 = arith.mulf %145, %149 : vector<16x64xf32>
    %cst_59 = arith.constant 1.42141378 : f32
    %151 = vector.broadcast %cst_59 : f32 to vector<16x64xf32>
    %152 = arith.addf %151, %150 : vector<16x64xf32>
    %153 = arith.mulf %145, %152 : vector<16x64xf32>
    %cst_60 = arith.constant -0.284496725 : f32
    %154 = vector.broadcast %cst_60 : f32 to vector<16x64xf32>
    %155 = arith.addf %154, %153 : vector<16x64xf32>
    %156 = arith.mulf %145, %155 : vector<16x64xf32>
    %cst_61 = arith.constant 0.254829586 : f32
    %157 = vector.broadcast %cst_61 : f32 to vector<16x64xf32>
    %158 = arith.addf %157, %156 : vector<16x64xf32>
    %159 = arith.mulf %145, %158 : vector<16x64xf32>
    %cst_62 = arith.constant 0.000000e+00 : f32
    %160 = vector.broadcast %cst_62 : f32 to vector<16x64xf32>
    %161 = arith.subf %160, %139 : vector<16x64xf32>
    %162 = arith.mulf %161, %139 : vector<16x64xf32>
    %163 = math.exp %162 : vector<16x64xf32>
    %164 = arith.mulf %159, %163 : vector<16x64xf32>
    %cst_63 = arith.constant 1.000000e+00 : f32
    %165 = vector.broadcast %cst_63 : f32 to vector<16x64xf32>
    %166 = arith.subf %165, %164 : vector<16x64xf32>
    %167 = arith.mulf %138, %166 : vector<16x64xf32>
    %cst_64 = arith.constant 1.000000e+00 : f32
    %168 = vector.broadcast %cst_64 : f32 to vector<16x64xf32>
    %169 = arith.addf %168, %167 : vector<16x64xf32>
    %170 = arith.mulf %131, %169 : vector<16x64xf32>
    %c0_65 = arith.constant 0 : index
    %c0_66 = arith.constant 0 : index
    %171 = vector.load %arg16[%c0_65, %c0_66] : memref<64x32xf32, #tpu.memory_space<vmem>>, vector<64x32xf32>
    %cst_67 = arith.constant dense<0.000000e+00> : vector<16x32xf32>
    %172 = tpu.matmul %170, %171, %cst_67 {dimension_numbers = #tpu.dot_dimension_numbers<[1], [0], [0], [1], [0, 0, 1, 1], [], []>} : vector<16x64xf32>, vector<64x32xf32>, vector<16x32xf32> -> vector<16x32xf32>
    %c0_68 = arith.constant 0 : index
    %c0_69 = arith.constant 0 : index
    %173 = vector.load %arg17[%c0_68, %c0_69] : memref<1x32xf32, #tpu.memory_space<vmem>>, vector<1x32xf32>
    %174 = vector.broadcast %173 : vector<1x32xf32> to vector<16x32xf32>
    %175 = arith.addf %172, %174 : vector<16x32xf32>
    %176 = arith.addf %102, %175 : vector<16x32xf32>
    %177 = vector.shape_cast %176 : vector<16x32xf32> to vector<2x8x32xf32>
    %c0_70 = arith.constant 0 : index
    %c0_71 = arith.constant 0 : index
    %c0_72 = arith.constant 0 : index
    %178 = vector.load %arg18[%c0_70, %c0_71, %c0_72] : memref<2x8x32xf32, #tpu.memory_space<vmem>>, vector<2x8x32xf32>
    tpu.vector_store %arg18[%c0_70, %c0_71, %c0_72], %177 {strides = array<i32>} : memref<2x8x32xf32, #tpu.memory_space<vmem>>, vector<2x8x32xf32>,
    return
  }
  func.func @transform_0(%arg0: i32) -> (i32, i32, i32) {
    %c0_i32 = arith.constant 0 : i32
    %c0_i32_0 = arith.constant 0 : i32
    %c0_i32_1 = arith.constant 0 : i32
    return %arg0, %c0_i32, %c0_i32_0 : i32, i32, i32
  }
  func.func @transform_1(%arg0: i32) -> (i32, i32) {
    %c0_i32 = arith.constant 0 : i32
    %c0_i32_0 = arith.constant 0 : i32
    %c0_i32_1 = arith.constant 0 : i32
    return %c0_i32, %c0_i32_0 : i32, i32
  }
  func.func @transform_2(%arg0: i32) -> (i32, i32) {
    %c0_i32 = arith.constant 0 : i32
    %c0_i32_0 = arith.constant 0 : i32
    %c0_i32_1 = arith.constant 0 : i32
    return %c0_i32, %c0_i32_0 : i32, i32
  }
  func.func @transform_3(%arg0: i32) -> (i32, i32) {
    %c0_i32 = arith.constant 0 : i32
    %c0_i32_0 = arith.constant 0 : i32
    %c0_i32_1 = arith.constant 0 : i32
    return %c0_i32, %c0_i32_0 : i32, i32
  }
  func.func @transform_4(%arg0: i32) -> (i32, i32) {
    %c0_i32 = arith.constant 0 : i32
    %c0_i32_0 = arith.constant 0 : i32
    %c0_i32_1 = arith.constant 0 : i32
    return %c0_i32, %c0_i32_0 : i32, i32
  }
  func.func @transform_5(%arg0: i32) -> (i32, i32) {
    %c0_i32 = arith.constant 0 : i32
    %c0_i32_0 = arith.constant 0 : i32
    %c0_i32_1 = arith.constant 0 : i32
    return %c0_i32, %c0_i32_0 : i32, i32
  }
  func.func @transform_6(%arg0: i32) -> (i32, i32) {
    %c0_i32 = arith.constant 0 : i32
    %c0_i32_0 = arith.constant 0 : i32
    %c0_i32_1 = arith.constant 0 : i32
    return %c0_i32, %c0_i32_0 : i32, i32
  }
  func.func @transform_7(%arg0: i32) -> (i32, i32) {
    %c0_i32 = arith.constant 0 : i32
    %c0_i32_0 = arith.constant 0 : i32
    %c0_i32_1 = arith.constant 0 : i32
    return %c0_i32, %c0_i32_0 : i32, i32
  }
  func.func @transform_8(%arg0: i32) -> (i32, i32) {
    %c0_i32 = arith.constant 0 : i32
    %c0_i32_0 = arith.constant 0 : i32
    %c0_i32_1 = arith.constant 0 : i32
    return %c0_i32, %c0_i32_0 : i32, i32
  }
  func.func @transform_9(%arg0: i32) -> (i32, i32) {
    %c0_i32 = arith.constant 0 : i32
    %c0_i32_0 = arith.constant 0 : i32
    %c0_i32_1 = arith.constant 0 : i32
    return %c0_i32, %c0_i32_0 : i32, i32
  }
  func.func @transform_10(%arg0: i32) -> (i32, i32) {
    %c0_i32 = arith.constant 0 : i32
    %c0_i32_0 = arith.constant 0 : i32
    %c0_i32_1 = arith.constant 0 : i32
    return %c0_i32, %c0_i32_0 : i32, i32
  }
  func.func @transform_11(%arg0: i32) -> (i32, i32) {
    %c0_i32 = arith.constant 0 : i32
    %c0_i32_0 = arith.constant 0 : i32
    %c0_i32_1 = arith.constant 0 : i32
    return %c0_i32, %c0_i32_0 : i32, i32
  }
  func.func @transform_12(%arg0: i32) -> (i32, i32) {
    %c0_i32 = arith.constant 0 : i32
    %c0_i32_0 = arith.constant 0 : i32
    %c0_i32_1 = arith.constant 0 : i32
    return %c0_i32, %c0_i32_0 : i32, i32
  }
  func.func @transform_13(%arg0: i32) -> (i32, i32) {
    %c0_i32 = arith.constant 0 : i32
    %c0_i32_0 = arith.constant 0 : i32
    %c0_i32_1 = arith.constant 0 : i32
    return %c0_i32, %c0_i32_0 : i32, i32
  }
  func.func @transform_14(%arg0: i32) -> (i32, i32) {
    %c0_i32 = arith.constant 0 : i32
    %c0_i32_0 = arith.constant 0 : i32
    %c0_i32_1 = arith.constant 0 : i32
    return %c0_i32, %c0_i32_0 : i32, i32
  }
  func.func @transform_15(%arg0: i32) -> (i32, i32) {
    %c0_i32 = arith.constant 0 : i32
    %c0_i32_0 = arith.constant 0 : i32
    %c0_i32_1 = arith.constant 0 : i32
    return %c0_i32, %c0_i32_0 : i32, i32
  }
  func.func @transform_16(%arg0: i32) -> (i32, i32) {
    %c0_i32 = arith.constant 0 : i32
    %c0_i32_0 = arith.constant 0 : i32
    %c0_i32_1 = arith.constant 0 : i32
    return %c0_i32, %c0_i32_0 : i32, i32
  }
  func.func @transform_17(%arg0: i32) -> (i32, i32, i32) {
    %c0_i32 = arith.constant 0 : i32
    %c0_i32_0 = arith.constant 0 : i32
    %c0_i32_1 = arith.constant 0 : i32
    return %arg0, %c0_i32, %c0_i32_0 : i32, i32, i32
  }
}

</mosaic_0001>

<bundles_post_ra>
// kernel: tpu_custom_call.1
= control target key start
LH: loop header
LB: loop body
LE: loop exit
PB: predicated region body
PF: predicated region fallthrough
CT: control target
= control target key end

     0   :  { %s3080_s0 = inlined_call_operand.hbm [shape: f32[2,8,32], index: 0, kind: input, shape index: {}]   ;;  %s3081_s1 = inlined_call_operand.vmem [shape: f32[1,32], index: 1, kind: input, shape index: {}]   ;;  %s3082_s2 = inlined_call_operand.vmem [shape: f32[1,32], index: 2, kind: input, shape index: {}]   ;;  %s3083_s3 = inlined_call_operand.vmem [shape: f32[32,32], index: 3, kind: input, shape index: {}]   ;;  %s3084_s4 = inlined_call_operand.vmem [shape: f32[1,32], index: 4, kind: input, shape index: {}]   ;;  %s3085_s5 = inlined_call_operand.vmem [shape: f32[32,32], index: 5, kind: input, shape index: {}]   ;;  %s3086_s6 = inlined_call_operand.vmem [shape: f32[1,32], index: 6, kind: input, shape index: {}]   ;;  %s3087_s7 = inlined_call_operand.vmem [shape: f32[32,32], index: 7, kind: input, shape index: {}]   ;;  %s3088_s8 = inlined_call_operand.vmem [shape: f32[1,32], index: 8, kind: input, shape index: {}]   ;;  %s3089_s9 = inlined_call_operand.hbm [shape: f32[32,32], index: 9, kind: input, shape index: {}]   ;;  %s3090_s10 = inlined_call_operand.vmem [shape: f32[1,32], index: 10, kind: input, shape index: {}]   ;;  %s3091_s11 = inlined_call_operand.vmem [shape: f32[1,32], index: 11, kind: input, shape index: {}]   ;;  %s3092_s12 = inlined_call_operand.vmem [shape: f32[1,32], index: 12, kind: input, shape index: {}]   ;;  %s3093_s13 = inlined_call_operand.hbm [shape: f32[32,64], index: 13, kind: input, shape index: {}]   ;;  %s3094_s14 = inlined_call_operand.vmem [shape: f32[1,64], index: 14, kind: input, shape index: {}]   ;;  %s3095_s15 = inlined_call_operand.vmem [shape: f32[64,32], index: 15, kind: input, shape index: {}]   ;;  %s3096_s16 = inlined_call_operand.vmem [shape: f32[1,32], index: 16, kind: input, shape index: {}]   ;;  %s3097_s17 = inlined_call_operand.hbm [shape: f32[2,8,32], index: 17, kind: output, shape index: {}]  }
   0x1   :  { %3099 = sst [smem:[#allocation12_spill]] %s3080_s0 }
   0x2   :  { %3100 = sst [smem:[#allocation13_spill]] %s3081_s1 }
   0x3   :  { %22 = vsyncpa [#allocation3], 0 }
   0x4   :  { %23 = vsyncpa [#allocation6], 0 }
   0x5   :  { %24 = vsyncpa [#allocation4], 0  ;;  %s2650_s24 = smov [#allocation5]   ;;  %s2651_s26 = smov [#allocation2]  }
   0x6   :  { %s58_s25 = sshll.u32 %s2650_s24, 4  ;;  %s30_s27 = sshll.u32 %s2651_s26, 4  ;;  %s59_s25 = int_to_ptr.vmem [resolvable:$true] %s58_s25  ;;  %s2754_s27 = int_to_ptr.vmem [resolvable:$true] %s30_s27 }
   0x7   :  { %s2556_s0 = scalar_lea.hbm %s3089_s9, 512 }
   0x8   :  { %p2557_p0 = scmp.ne.s32.totalorder %s3089_s9, %s2556_s0  ;;  %p2560_p1 = scmp.lt.u32.totalorder %s2556_s0, %s3089_s9 }
   0xa   :  { %p2562_p2 = pnand %p2560_p1, %p2557_p0 }
   0xc   :  { %2565 = shalt.err (!%p2562_p2)
}
   0xd   :  { %s2566_s20 = scalar_lea.vmem %s59_s25, 512  ;;  %p2571_p4 = scmp.lt.s32.totalorder %s59_s25, %s59_s25 }
   0xe   :  { %p2567_p3 = scmp.ne.s32.totalorder %s59_s25, %s2566_s20  ;;  %p2572_p5 = scmp.lt.s32.totalorder %s2566_s20, %s2566_s20 }
  0x10   :  { %p2573_p6 = por %p2572_p5, %p2571_p4 }
  0x12   :  { %p2574_p7 = pnand %p2573_p6, %p2567_p3 }
  0x14   :  { %2577 = shalt.err (!%p2574_p7)
}
  0x15   :  { %s2652_s21 = smov 128   ;;  %s2653_s22 = smov 8  }
  0x16   :  { %64 = dma.hbm_to_vmem [thread:$0]  %s3089_s9, 512, %s59_s25, [#allocation6], %s2652_s21, %s2652_s21, %s2653_s22  }
  0x17   :  { %s3101_s29 = sld [smem:[#allocation12_spill]] }
  0x1d   :  { %s2578_s0 = scalar_lea.hbm %s3101_s29, 256 }
  0x1e   :  { %p2579_p8 = scmp.ne.s32.totalorder %s3101_s29, %s2578_s0  ;;  %p2582_p9 = scmp.lt.u32.totalorder %s2578_s0, %s3101_s29 }
  0x20   :  { %p2584_p10 = pnand %p2582_p9, %p2579_p8 }
  0x22   :  { %2587 = shalt.err (!%p2584_p10)
}
  0x23   :  { %s2588_s20 = scalar_lea.vmem %s2754_s27, 256  ;;  %p2593_p12 = scmp.lt.s32.totalorder %s2754_s27, %s2754_s27 }
  0x24   :  { %p2589_p11 = scmp.ne.s32.totalorder %s2754_s27, %s2588_s20  ;;  %p2594_p13 = scmp.lt.s32.totalorder %s2588_s20, %s2588_s20 }
  0x26   :  { %p2595_p0 = por %p2594_p13, %p2593_p12 }
  0x28   :  { %p2596_p1 = pnand %p2595_p0, %p2589_p11 }
  0x2a   :  { %2599 = shalt.err (!%p2596_p1)
}
  0x2b   :  { %36 = dma.hbm_to_vmem [thread:$0]  %s3101_s29, 256, %s2754_s27, [#allocation3], %s2652_s21, %s2652_s21, %s2653_s22  }
  0x2c   :  { %s2654_s23 = smov [#allocation7]   ;;  %s2600_s0 = scalar_lea.hbm %s3093_s13, 512 }
  0x2d   :  { %s76_s24 = sshll.u32 %s2654_s23, 4  ;;  %p2601_p2 = scmp.ne.s32.totalorder %s3093_s13, %s2600_s0  ;;  %s77_s24 = int_to_ptr.vmem [resolvable:$true] %s76_s24 }
  0x2e   :  { %p2604_p3 = scmp.lt.u32.totalorder %s2600_s0, %s3093_s13 }
  0x30   :  { %p2606_p4 = pnand %p2604_p3, %p2601_p2 }
  0x32   :  { %2609 = shalt.err (!%p2606_p4)
}
  0x33   :  { %s2610_s20 = scalar_lea.vmem %s77_s24, 512  ;;  %p2615_p6 = scmp.lt.s32.totalorder %s77_s24, %s77_s24 }
  0x34   :  { %p2611_p5 = scmp.ne.s32.totalorder %s77_s24, %s2610_s20  ;;  %p2616_p7 = scmp.lt.s32.totalorder %s2610_s20, %s2610_s20 }
  0x36   :  { %p2617_p8 = por %p2616_p7, %p2615_p6 }
  0x38   :  { %p2618_p9 = pnand %p2617_p8, %p2611_p5 }
  0x3a   :  { %2621 = shalt.err (!%p2618_p9)
}
  0x3b   :  { %82 = dma.hbm_to_vmem [thread:$0]  %s3093_s13, 512, %s77_s24, [#allocation6], %s2652_s21, %s2652_s21, %s2653_s22  }
  0x3c   :  { %2644 = dma.done.wait [#allocation3], 256  }
  0x3d   :  { %2645 = vsyncadd [#allocation3], 4294967040 }
  0x3e   :  { %2646 = dma.done.wait [#allocation6], 1024  }
  0x3f   :  { %2647 = vsyncadd [#allocation6], 4294966272  ;;  %vm102_vm0 = vcmask 261120   ;;  %v2806_v0 = vld [vmem:[#allocation2] sm:$0xff]  ;;  %v2808_v1 = vld [vmem:[#allocation2 + $0x8] sm:$0xff]  ;;  %s3102_s26 = sld [smem:[#allocation13_spill]] }
  0x40   :  { %v103_v2 = vsel %vm102_vm0, %v2806_v0, 0.0  ;;  %v106_v3 = vsel %vm102_vm0, %v2808_v1, 0.0  ;;  %v146_v14 = vld [vmem:[%s3083_s3] sm:$0xff]  ;;  %v147_v15 = vld [vmem:[%s3083_s3 + $0x8] sm:$0xff]  ;;  %v148_v19 = vld [vmem:[%s3083_s3 + $0x10] sm:$0xff]  ;;  %v2655_v48 = vmov 0.0  }
  0x41   :  { %104 = vadd.xlane.f32.xlu0 %v103_v2  ;;  %v324_v16 = vld [vmem:[%s3087_s7] sm:$0xff]  ;;  %v2438_v17 = vpack.c.bf16 %v147_v15, %v146_v14  ;;  %v325_v18 = vld [vmem:[%s3087_s7 + $0x8] sm:$0xff]  ;;  %v149_v20 = vld [vmem:[%s3083_s3 + $0x18] sm:$0xff]  ;;  %vm2656_vm1 = vmmov 0   ;;  %s2657_s20 = smov 120   ;;  %s2658_s27 = smov 112  }
  0x42   :  { %v2454_v21 = vpack.c.bf16 %v325_v18, %v324_v16  ;;  %v2442_v22 = vpack.c.bf16 %v149_v20, %v148_v19  ;;  %v326_v23 = vld [vmem:[%s3087_s7 + $0x10] sm:$0xff]  ;;  %v327_v24 = vld [vmem:[%s3087_s7 + $0x18] sm:$0xff]  ;;  %v238_v26 = vld [vmem:[%s3085_s5] sm:$0xff]  ;;  %vm458_vm2 = vcmask 64512   ;;  %s2661_s3 = smov 24   ;;  %vm1757_vm3 = vcmask 130048  }
  0x43   :  { %2439 = vmatprep.subr.bf16.mxu1 %v2438_v17  ;;  %v2458_v25 = vpack.c.bf16 %v327_v24, %v326_v23  ;;  %v239_v27 = vld [vmem:[%s3085_s5 + $0x8] sm:$0xff]  ;;  %v2167_v38 = vld [vmem:[%s3082_s2] ss:$0 sm:$0xff]  ;;  %v240_v43 = vld [vmem:[%s3085_s5 + $0x10] sm:$0xff]  ;;  %vm1760_vm4 = vcmask 195584   ;;  %vm2062_vm7 = vcmask 523264  }
  0x44   :  { %2441 = vmatpush3.bf16.msra.mxu1 %v2438_v17  ;;  %2455 = vmatprep.subr.bf16.mxu0 %v2454_v21  ;;  %v2446_v28 = vpack.c.bf16 %v239_v27, %v238_v26  ;;  %v241_v44 = vld [vmem:[%s3085_s5 + $0x18] sm:$0xff]  ;;  %v2168_v49 = vld [vmem:[%s3084_s4] ss:$0 sm:$0xff]  ;;  %s2659_s4 = smov 104  }
  0x45   :  { %107 = vadd.xlane.f32.xlu0 %v106_v3  ;;  %2457 = vmatpush3.bf16.msra.mxu0 %v2454_v21  ;;  %v2166_v36 = vld [vmem:[%s3102_s26] ss:$0 sm:$0xff]  ;;  %v2450_v47 = vpack.c.bf16 %v241_v44, %v240_v43 }
  0x46   :  { %2443 = vmatprep.subr.bf16.mxu1 %v2442_v22  ;;  %2459 = vmatprep.subr.bf16.mxu0 %v2458_v25  ;;  %v2171_v56 = vld [vmem:[%s3086_s6] ss:$0 sm:$0xff] }
  0x48   :  { %2445 = vmatpush3.bf16.msra.mxu1 %v2442_v22 }
  0x49   :  { %2461 = vmatpush3.bf16.msra.mxu0 %v2458_v25  ;;  %2447 = vmatprep.subr.bf16.mxu1 %v2446_v28 }
  0x4a   :  { %2327 = vmatprep.subr.mxu0 %v2655_v48 }
  0xce   :  { %v105_v4 = vpop.xlane.xlu0 %104 }
  0xcf   :  { %v110_v5 = vmul.f32 0.03125, %v105_v4 }
  0xd1   :  { %v112_v6 = vsub.f32 %v2806_v0, %v110_v5 }
  0xd2   :  { %v108_v7 = vpop.xlane.xlu0 %107 }
  0xd3   :  { %v111_v8 = vmul.f32 0.03125, %v108_v7  ;;  %v114_v9 = vmul.f32 %v112_v6, %v112_v6 }
  0xd5   :  { %v113_v10 = vsub.f32 %v2808_v1, %v111_v8  ;;  %v116_v11 = vsel %vm102_vm0, %v114_v9, 0.0  ;;  %v2174_v8 = vld [vmem:[%s3088_s8] ss:$0 sm:$0xff]  ;;  %s2660_s8 = smov 16  }
  0xd6   :  { %117 = vadd.xlane.f32.xlu1 %v116_v11 }
  0xd7   :  { %v115_v12 = vmul.f32 %v113_v10, %v113_v10 }
  0xd9   :  { %v119_v13 = vsel %vm102_vm0, %v115_v12, 0.0 }
  0xda   :  { %120 = vadd.xlane.f32.xlu1 %v119_v13 }
 0x163   :  { %v118_v29 = vpop.xlane.xlu1 %117 }
 0x164   :  { %v122_v30 = vmul.f32 0.03125, %v118_v29 }
 0x166   :  { %v124_v31 = vadd.f32 1e-05, %v122_v30 }
 0x167   :  { %v121_v32 = vpop.xlane.xlu1 %120 }
 0x168   :  { %2508 = vrsqrt.f32 %v124_v31  ;;  %v123_v33 = vmul.f32 0.03125, %v121_v32 }
 0x16a   :  { %v125_v34 = vadd.f32 1e-05, %v123_v33 }
 0x16c   :  { %2510 = vrsqrt.f32 %v125_v34 }
 0x172   :  { %v2509_v35 = vpop.eup %2508 }
 0x173   :  { %v128_v37 = vmul.f32 %v2509_v35, %v112_v6 }
 0x175   :  { %v136_v39 = vmul.f32 %v2166_v36, %v128_v37 }
 0x176   :  { %v2511_v40 = vpop.eup %2510 }
 0x177   :  { %v129_v41 = vmul.f32 %v2511_v40, %v113_v10  ;;  %v144_v42 = vadd.f32 %v2167_v38, %v136_v39 }
 0x179   :  { %v137_v45 = vmul.f32 %v2166_v36, %v129_v41  ;;  %2292 = vmatprep.mubr.msk.f32.mxu1 %vm102_vm0, %v144_v42  ;;  %2314 = vmatprep.mubr.msk.f32.mxu0 %vm102_vm0, %v144_v42 }
 0x17b   :  { %v145_v46 = vadd.f32 %v2167_v38, %v137_v45 }
 0x17d   :  { %2293 = vmatmul.mubr.msk.f32.vlgmr.msra.gmra.mrb[0].mxu1 %vm102_vm0, %v145_v46  ;;  %2315 = vmatmul.mubr.msk.f32.vlgmr.msra.gmra.mrb[0].mxu0 %vm102_vm0, %v145_v46 }
 0x17e   :  { %2449 = vmatpush3.bf16.msra.mxu1 %v2446_v28  ;;  %2303 = vmatprep.mubr.msk.f32.mxu1 %vm102_vm0, %v144_v42 }
 0x17f   :  { %2451 = vmatprep.subr.bf16.mxu1 %v2450_v47  ;;  %2329 = vmatprep.mubr.msk.f32.mxu0 %vm2656_vm1, %v2655_v48 }
 0x182   :  { %2453 = vmatpush3.bf16.msra.mxu1 %v2450_v47 }
 0x183   :  { %2317 = vmatprep.subr.mxu1 %v2655_v48 }
 0x185   :  { %2304 = vmatmul.mubr.msk.f32.vlgmr.msra.gmra.mrb[2].mxu1 %vm102_vm0, %v145_v46 }
 0x186   :  { %2319 = vmatprep.mubr.msk.f32.mxu1 %vm2656_vm1, %v2655_v48 }
 0x250   :  { %v2294_v50 = vpop.f32.mrb[0].mxu1  ;;  %v2875_v51 = vpop.f32.mrb[0].mxu0 }
 0x251   :  { %v235_v52 = vadd.f32 %v2294_v50, %v2168_v49  ;;  %v229_v53 = vpop.f32.mrb[1].mxu1  ;;  %v401_v54 = vpop.f32.mrb[1].mxu0  ;;  %v2936_v12 = vadd.f32 %v2875_v51, %v2174_v8 }
 0x252   :  { %v230_v55 = vadd.f32 %v2168_v49, %v229_v53  ;;  %v2925_v10 = vadd.f32 %v2174_v8, %v401_v54 }
 0x253   :  { %414 = vrot.lane.b32.xlu1 %v235_v52, %s2657_s20 }
 0x254   :  { %416 = vrot.lane.b32.xlu0 %v230_v55, %s2658_s27 }
 0x257   :  { %418 = vrot.lane.b32.xlu1 %v235_v52, %s2658_s27 }
 0x258   :  { %v2305_v57 = vpop.f32.mrb[2].mxu1 }
 0x259   :  { %v315_v58 = vpop.f32.mrb[3].mxu1  ;;  %v321_v60 = vadd.f32 %v2305_v57, %v2171_v56 }
 0x25a   :  { %v316_v59 = vadd.f32 %v2171_v56, %v315_v58 }
 0x25b   :  { %412 = vrot.lane.b32.xlu1 %v230_v55, %s2657_s20 }
 0x25c   :  { %2318 = vmatpush3.xpose.msk.msra.mxu1 %vm458_vm2, %v316_v59  ;;  %426 = vrot.lane.b32.xlu0 %v316_v59, %s2657_s20 }
 0x25d   :  { %2322 = vmatprep.subr.mxu1 %v2655_v48 }
 0x25f   :  { %2320 = vmatmul.mubr.msk.f32.vlgmr.msra.gmra.mrb[4].mxu1 %vm458_vm2, %v230_v55  ;;  %428 = vrot.lane.b32.xlu1 %v321_v60, %s2657_s20 }
 0x260   :  { %430 = vrot.lane.b32.xlu0 %v316_v59, %s2658_s27  ;;  %2323 = vmatpush3.xpose.msk.msra.mxu1 %vm458_vm2, %v321_v60 }
 0x261   :  { %2324 = vmatprep.mubr.msk.f32.mxu1 %vm2656_vm1, %v2655_v48  ;;  %2332 = vmatprep.subr.mxu1 %v2655_v48 }
 0x263   :  { %2325 = vmatmul.mubr.msk.f32.vlgmr.msra.gmra.mrb[6].mxu1 %vm458_vm2, %v235_v52  ;;  %432 = vrot.lane.b32.xlu1 %v321_v60, %s2658_s27 }
 0x264   :  { %434 = vrot.lane.b32.xlu0 %v316_v59, %s2659_s4  ;;  %2334 = vmatprep.mubr.msk.f32.mxu1 %vm2656_vm1, %v2655_v48 }
 0x267   :  { %436 = vrot.lane.b32.xlu1 %v321_v60, %s2659_s4 }
 0x268   :  { %420 = vrot.lane.b32.xlu0 %v230_v55, %s2659_s4 }
 0x26b   :  { %422 = vrot.lane.b32.xlu1 %v235_v52, %s2659_s4 }
 0x2c5   :  { %v415_v61 = vpop.permute.xlu1 %414 }
 0x2c6   :  { %v417_v63 = vpop.permute.xlu0 %416 }
 0x2c9   :  { %v419_v62 = vpop.permute.xlu1 %418 }
 0x2cd   :  { %v413_v2 = vpop.permute.xlu1 %412 }
 0x2ce   :  { %v427_v3 = vpop.permute.xlu0 %426 }
 0x2cf   :  { %2328 = vmatpush3.xpose.msk.msra.mxu0 %vm458_vm2, %v427_v3 }
 0x2d0   :  { %2337 = vmatprep.subr.mxu0 %v2655_v48 }
 0x2d1   :  { %v429_v4 = vpop.permute.xlu1 %428 }
 0x2d2   :  { %v431_v5 = vpop.permute.xlu0 %430  ;;  %2330 = vmatmul.mubr.msk.f32.vlgmr.msra.gmra.mrb[2].mxu0 %vm458_vm2, %v413_v2  ;;  %2333 = vmatpush3.xpose.msk.msra.mxu1 %vm458_vm2, %v429_v4 }
 0x2d3   :  { %2338 = vmatpush3.xpose.msk.msra.mxu0 %vm458_vm2, %v431_v5  ;;  %2339 = vmatprep.mubr.msk.f32.mxu0 %vm2656_vm1, %v2655_v48 }
 0x2d4   :  { %2347 = vmatprep.subr.mxu0 %v2655_v48  ;;  %2342 = vmatprep.subr.mxu1 %v2655_v48 }
 0x2d5   :  { %v433_v6 = vpop.permute.xlu1 %432  ;;  %2335 = vmatmul.mubr.msk.f32.vlgmr.msra.gmra.mrb[8].mxu1 %vm458_vm2, %v415_v61 }
 0x2d6   :  { %v435_v7 = vpop.permute.xlu0 %434  ;;  %2340 = vmatmul.mubr.msk.f32.vlgmr.msra.gmra.mrb[4].mxu0 %vm458_vm2, %v417_v63  ;;  %2343 = vmatpush3.xpose.msk.msra.mxu1 %vm458_vm2, %v433_v6 }
 0x2d7   :  { %2348 = vmatpush3.xpose.msk.msra.mxu0 %vm458_vm2, %v435_v7  ;;  %2344 = vmatprep.mubr.msk.f32.mxu1 %vm2656_vm1, %v2655_v48 }
 0x2d8   :  { %2349 = vmatprep.mubr.msk.f32.mxu0 %vm2656_vm1, %v2655_v48  ;;  %2357 = vmatprep.subr.mxu0 %v2655_v48 }
 0x2d9   :  { %v437_v9 = vpop.permute.xlu1 %436  ;;  %2345 = vmatmul.mubr.msk.f32.vlgmr.msra.gmra.mrb[10].mxu1 %vm458_vm2, %v419_v62  ;;  %2352 = vmatprep.subr.mxu1 %v2655_v48 }
 0x2da   :  { %v421_v11 = vpop.permute.xlu0 %420  ;;  %2353 = vmatpush3.xpose.msk.msra.mxu1 %vm458_vm2, %v437_v9  ;;  %2354 = vmatprep.mubr.msk.f32.mxu1 %vm2656_vm1, %v2655_v48 }
 0x2db   :  { %2350 = vmatmul.mubr.msk.f32.vlgmr.msra.gmra.mrb[6].mxu0 %vm458_vm2, %v421_v11  ;;  %2362 = vmatprep.subr.mxu1 %v2655_v48 }
 0x2dc   :  { %2358 = vmatpush3.msra.mxu0 %v2925_v10  ;;  %2359 = vmatprep.mubr.msk.f32.mxu0 %vm2656_vm1, %v2655_v48 }
 0x2dd   :  { %v423_v13 = vpop.permute.xlu1 %422  ;;  %2367 = vmatprep.subr.mxu0 %v2655_v48 }
 0x2de   :  { %2355 = vmatmul.mubr.msk.f32.vlgmr.msra.gmra.mrb[12].mxu1 %vm458_vm2, %v423_v13 }
 0x2df   :  { %2363 = vmatpush3.msra.mxu1 %v2936_v12  ;;  %2364 = vmatprep.mubr.msk.f32.mxu1 %vm2656_vm1, %v2655_v48 }
 0x2e0   :  { %2372 = vmatprep.subr.mxu1 %v2655_v48 }
 0x332   :  { %v529_v14 = vpop.f32.mrb[4].mxu1 }
 0x333   :  { %v1051_v15 = vmul.f32 0.35355338, %v529_v14  ;;  %v2321_v16 = vpop.f32.mrb[5].mxu1 }
 0x335   :  { %v1059_v17 = vsel %vm458_vm2, %v1051_v15, -inf }
 0x336   :  { %1060 = vmax.xlane.f32.xlu0 %v1059_v17  ;;  %v603_v18 = vpop.f32.mrb[6].mxu1 }
 0x337   :  { %v1052_v19 = vmul.f32 0.35355338, %v603_v18  ;;  %v2326_v20 = vpop.f32.mrb[7].mxu1 }
 0x339   :  { %v1062_v21 = vsel %vm458_vm2, %v1052_v19, -inf }
 0x33a   :  { %1063 = vmax.xlane.f32.xlu1 %v1062_v21 }
 0x3a5   :  { %v677_v22 = vpop.f32.mrb[2].mxu0 }
 0x3a6   :  { %v2331_v23 = vpop.f32.mrb[3].mxu0  ;;  %v1053_v29 = vmul.f32 0.35355338, %v677_v22 }
 0x3a8   :  { %v751_v24 = vpop.f32.mrb[8].mxu1  ;;  %v1065_v37 = vsel %vm458_vm2, %v1053_v29, -inf }
 0x3a9   :  { %v1054_v25 = vmul.f32 0.35355338, %v751_v24  ;;  %v825_v26 = vpop.f32.mrb[4].mxu0  ;;  %v2336_v27 = vpop.f32.mrb[9].mxu1 }
 0x3aa   :  { %v2341_v28 = vpop.f32.mrb[5].mxu0  ;;  %v1055_v35 = vmul.f32 0.35355338, %v825_v26 }
 0x3ab   :  { %v1068_v30 = vsel %vm458_vm2, %v1054_v25, -inf }
 0x3ac   :  { %1069 = vmax.xlane.f32.xlu0 %v1068_v30  ;;  %v899_v31 = vpop.f32.mrb[10].mxu1  ;;  %v1071_v43 = vsel %vm458_vm2, %v1055_v35, -inf }
 0x3ad   :  { %v1056_v32 = vmul.f32 0.35355338, %v899_v31  ;;  %v2346_v33 = vpop.f32.mrb[11].mxu1 }
 0x3ae   :  { %v973_v34 = vpop.f32.mrb[6].mxu0 }
 0x3af   :  { %v2351_v36 = vpop.f32.mrb[7].mxu0  ;;  %v1074_v38 = vsel %vm458_vm2, %v1056_v32, -inf  ;;  %v1057_v42 = vmul.f32 0.35355338, %v973_v34 }
 0x3b0   :  { %1066 = vmax.xlane.f32.xlu0 %v1065_v37  ;;  %1075 = vmax.xlane.f32.xlu1 %v1074_v38 }
 0x3b1   :  { %v1047_v39 = vpop.f32.mrb[12].mxu1  ;;  %v1077_v45 = vsel %vm458_vm2, %v1057_v42, -inf }
 0x3b2   :  { %v1058_v40 = vmul.f32 0.35355338, %v1047_v39  ;;  %v2356_v41 = vpop.f32.mrb[13].mxu1 }
 0x3b4   :  { %1072 = vmax.xlane.f32.xlu0 %v1071_v43  ;;  %v1080_v44 = vsel %vm458_vm2, %v1058_v40, -inf }
 0x3b5   :  { %1081 = vmax.xlane.f32.xlu1 %v1080_v44 }
 0x3b8   :  { %1078 = vmax.xlane.f32.xlu0 %v1077_v45 }
 0x3c3   :  { %v1061_v46 = vpop.xlane.xlu0 %1060 }
 0x3c4   :  { %v1083_v47 = vsub.f32 %v1051_v15, %v1061_v46 }
 0x3c6   :  { %442 = vrot.lane.b32.xlu1 %v2936_v12, %s2657_s20  ;;  %v1091_v50 = vmul.f32 1.442695, %v1083_v47 }
 0x3c7   :  { %v1064_v49 = vpop.xlane.xlu1 %1063 }
 0x3c8   :  { %v1084_v51 = vsub.f32 %v1052_v19, %v1064_v49  ;;  %2512 = vpow2.f32 %v1091_v50 }
 0x3ca   :  { %446 = vrot.lane.b32.xlu1 %v2925_v10, %s2658_s27  ;;  %v1093_v52 = vmul.f32 1.442695, %v1084_v51 }
 0x3cc   :  { %2514 = vpow2.f32 %v1093_v52 }
 0x3ce   :  { %440 = vrot.lane.b32.xlu0 %v2925_v10, %s2657_s20  ;;  %448 = vrot.lane.b32.xlu1 %v2936_v12, %s2658_s27 }
 0x3d2   :  { %v2513_v53 = vpop.eup %2512 }
 0x3d3   :  { %v1107_v54 = vsel %vm458_vm2, %v2513_v53, 0.0 }
 0x3d6   :  { %v2515_v55 = vpop.eup %2514 }
 0x3d7   :  { %v1110_v56 = vsel %vm458_vm2, %v2515_v55, 0.0 }
 0x3ed   :  { %1108 = vadd.xlane.f32.xlu0 %v1107_v54 }
 0x3f2   :  { %1111 = vadd.xlane.f32.xlu1 %v1110_v56 }
 0x439   :  { %v1070_v57 = vpop.xlane.xlu0 %1069 }
 0x43a   :  { %v1086_v58 = vsub.f32 %v1054_v25, %v1070_v57 }
 0x43c   :  { %v1097_v59 = vmul.f32 1.442695, %v1086_v58 }
 0x43d   :  { %v1067_v60 = vpop.xlane.xlu0 %1066  ;;  %v1076_v61 = vpop.xlane.xlu1 %1075 }
 0x43e   :  { %2516 = vpow2.f32 %v1097_v59  ;;  %v1085_v62 = vsub.f32 %v1053_v29, %v1067_v60  ;;  %v1088_v63 = vsub.f32 %v1056_v32, %v1076_v61  ;;  %v1763_v60 = vld [vmem:[#allocation5] sm:$0xff]  ;;  %v1764_v61 = vld [vmem:[#allocation5 + $0x8] sm:$0xff] }
 0x440   :  { %v1095_v2 = vmul.f32 1.442695, %v1085_v62  ;;  %v1101_v3 = vmul.f32 1.442695, %v1088_v63  ;;  %v2462_v62 = vpack.c.bf16 %v1764_v61, %v1763_v60  ;;  %v1765_v63 = vld [vmem:[#allocation5 + $0x10] sm:$0xff] }
 0x441   :  { %v1073_v4 = vpop.xlane.xlu0 %1072  ;;  %v2205_v60 = vld [vmem:[%s3092_s12] ss:$0 sm:$0xff] }
 0x442   :  { %2518 = vpow2.f32 %v1095_v2  ;;  %v1087_v5 = vsub.f32 %v1055_v35, %v1073_v4  ;;  %v1082_v6 = vpop.xlane.xlu1 %1081  ;;  %v1766_v2 = vld [vmem:[#allocation5 + $0x18] sm:$0xff] }
 0x443   :  { %2520 = vpow2.f32 %v1101_v3  ;;  %v1090_v7 = vsub.f32 %v1058_v40, %v1082_v6  ;;  %v2466_v3 = vpack.c.bf16 %v1766_v2, %v1765_v63 }
 0x444   :  { %v1099_v8 = vmul.f32 1.442695, %v1087_v5 }
 0x445   :  { %v1105_v9 = vmul.f32 1.442695, %v1090_v7  ;;  %v1079_v11 = vpop.xlane.xlu0 %1078 }
 0x446   :  { %2522 = vpow2.f32 %v1099_v8  ;;  %v1089_v13 = vsub.f32 %v1057_v42, %v1079_v11  ;;  %v443_v27 = vpop.permute.xlu1 %442 }
 0x447   :  { %2524 = vpow2.f32 %v1105_v9 }
 0x448   :  { %v2517_v14 = vpop.eup %2516  ;;  %v1103_v15 = vmul.f32 1.442695, %v1089_v13 }
 0x449   :  { %v1116_v16 = vsel %vm458_vm2, %v2517_v14, 0.0  ;;  %v441_v29 = vpop.permute.xlu0 %440 }
 0x44a   :  { %2526 = vpow2.f32 %v1103_v15  ;;  %1117 = vadd.xlane.f32.xlu1 %v1116_v16  ;;  %v447_v28 = vpop.permute.xlu1 %446 }
 0x44c   :  { %v2519_v17 = vpop.eup %2518 }
 0x44d   :  { %v2521_v18 = vpop.eup %2520  ;;  %v1113_v19 = vsel %vm458_vm2, %v2519_v17, 0.0 }
 0x44e   :  { %1114 = vadd.xlane.f32.xlu0 %v1113_v19  ;;  %v1122_v20 = vsel %vm458_vm2, %v2521_v18, 0.0  ;;  %v449_v31 = vpop.permute.xlu1 %448 }
 0x44f   :  { %1123 = vadd.xlane.f32.xlu1 %v1122_v20 }
 0x450   :  { %v2523_v21 = vpop.eup %2522 }
 0x451   :  { %v2525_v22 = vpop.eup %2524  ;;  %v1119_v23 = vsel %vm458_vm2, %v2523_v21, 0.0 }
 0x452   :  { %1120 = vadd.xlane.f32.xlu0 %v1119_v23  ;;  %v1128_v24 = vsel %vm458_vm2, %v2525_v22, 0.0 }
 0x453   :  { %1129 = vadd.xlane.f32.xlu1 %v1128_v24 }
 0x454   :  { %v2967_v25 = vpop.eup %2526 }
 0x455   :  { %v1125_v26 = vsel %vm458_vm2, %v2967_v25, 0.0 }
 0x456   :  { %1126 = vadd.xlane.f32.xlu0 %v1125_v26 }
 0x464   :  { %454 = vrot.lane.b32.xlu1 %v2936_v12, %s2659_s4 }
 0x46c   :  { %452 = vrot.lane.b32.xlu0 %v2925_v10, %s2659_s4 }
 0x47a   :  { %v1109_v30 = vpop.xlane.xlu0 %1108 }
 0x47b   :  { %2528 = vrcp.f32 %v1109_v30 }
 0x47f   :  { %v1112_v32 = vpop.xlane.xlu1 %1111 }
 0x480   :  { %2530 = vrcp.f32 %v1112_v32 }
 0x485   :  { %v2529_v33 = vpop.eup %2528 }
 0x486   :  { %v1139_v34 = vmul.f32 %v2529_v33, %v2513_v53 }
 0x488   :  { %2360 = vmatmul.mubr.msk.f32.vlgmr.msra.gmra.mrb[8].mxu0 %vm458_vm2, %v1139_v34 }
 0x489   :  { %2368 = vmatpush3.msra.mxu0 %v441_v29  ;;  %2369 = vmatprep.mubr.msk.f32.mxu0 %vm2656_vm1, %v2655_v48  ;;  %v2201_v29 = vld [vmem:[%s3090_s10] ss:$0 sm:$0xff] }
 0x48a   :  { %v2531_v12 = vpop.eup %2530  ;;  %2377 = vmatprep.subr.mxu0 %v2655_v48 }
 0x48b   :  { %v1140_v10 = vmul.f32 %v2531_v12, %v2515_v55 }
 0x48d   :  { %2365 = vmatmul.mubr.msk.f32.vlgmr.msra.gmra.mrb[14].mxu1 %vm458_vm2, %v1140_v10 }
 0x48e   :  { %2373 = vmatpush3.msra.mxu1 %v443_v27  ;;  %2374 = vmatprep.mubr.msk.f32.mxu1 %vm2656_vm1, %v2655_v48 }
 0x48f   :  { %2382 = vmatprep.subr.mxu1 %v2655_v48 }
 0x4d7   :  { %v1118_v35 = vpop.xlane.xlu1 %1117 }
 0x4d8   :  { %2532 = vrcp.f32 %v1118_v35 }
 0x4db   :  { %v1115_v36 = vpop.xlane.xlu0 %1114 }
 0x4dc   :  { %2534 = vrcp.f32 %v1115_v36  ;;  %v1124_v37 = vpop.xlane.xlu1 %1123 }
 0x4dd   :  { %2536 = vrcp.f32 %v1124_v37 }
 0x4df   :  { %v1121_v38 = vpop.xlane.xlu0 %1120 }
 0x4e0   :  { %2538 = vrcp.f32 %v1121_v38  ;;  %v1130_v39 = vpop.xlane.xlu1 %1129 }
 0x4e1   :  { %2540 = vrcp.f32 %v1130_v39 }
 0x4e2   :  { %v2533_v40 = vpop.eup %2532 }
 0x4e3   :  { %v1142_v41 = vmul.f32 %v2533_v40, %v2517_v14  ;;  %v1127_v42 = vpop.xlane.xlu0 %1126 }
 0x4e4   :  { %2542 = vrcp.f32 %v1127_v42  ;;  %v455_v49 = vpop.permute.xlu1 %454 }
 0x4e5   :  { %2375 = vmatmul.mubr.msk.f32.vlgmr.msra.gmra.mrb[16].mxu1 %vm458_vm2, %v1142_v41 }
 0x4e6   :  { %v2535_v43 = vpop.eup %2534  ;;  %2383 = vmatpush3.msra.mxu1 %v449_v31  ;;  %2384 = vmatprep.mubr.msk.f32.mxu1 %vm2656_vm1, %v2655_v48 }
 0x4e7   :  { %v2537_v44 = vpop.eup %2536  ;;  %v1141_v45 = vmul.f32 %v2535_v43, %v2519_v17  ;;  %2392 = vmatprep.subr.mxu1 %v2655_v48  ;;  %v453_v53 = vpop.permute.xlu0 %452 }
 0x4e8   :  { %v1144_v46 = vmul.f32 %v2537_v44, %v2521_v18  ;;  %v1901_v44 = vld [vmem:[#allocation7] sm:$0xff] }
 0x4e9   :  { %2370 = vmatmul.mubr.msk.f32.vlgmr.msra.gmra.mrb[10].mxu0 %vm458_vm2, %v1141_v45  ;;  %v1902_v45 = vld [vmem:[#allocation7 + $0x8] sm:$0xff] }
 0x4ea   :  { %v2539_v47 = vpop.eup %2538  ;;  %2378 = vmatpush3.msra.mxu0 %v447_v28  ;;  %2385 = vmatmul.mubr.msk.f32.vlgmr.msra.gmra.mrb[18].mxu1 %vm458_vm2, %v1144_v46  ;;  %v2470_v46 = vpack.c.bf16 %v1902_v45, %v1901_v44 }
 0x4eb   :  { %v2541_v50 = vpop.eup %2540  ;;  %v1143_v51 = vmul.f32 %v2539_v47, %v2523_v21  ;;  %2393 = vmatpush3.msra.mxu1 %v455_v49  ;;  %2379 = vmatprep.mubr.msk.f32.mxu0 %vm2656_vm1, %v2655_v48  ;;  %v1903_v47 = vld [vmem:[#allocation7 + $0x10] sm:$0xff]  ;;  %v1904_v49 = vld [vmem:[#allocation7 + $0x18] sm:$0xff] }
 0x4ec   :  { %v1146_v52 = vmul.f32 %v2541_v50, %v2525_v22  ;;  %2387 = vmatprep.subr.mxu0 %v2655_v48  ;;  %2394 = vmatprep.mubr.msk.f32.mxu1 %vm2656_vm1, %v2655_v48  ;;  %v2474_v50 = vpack.c.bf16 %v1904_v49, %v1903_v47 }
 0x4ed   :  { %2380 = vmatmul.mubr.msk.f32.vlgmr.msra.gmra.mrb[12].mxu0 %vm458_vm2, %v1143_v51  ;;  %2471 = vmatprep.subr.bf16.mxu1 %v2470_v46 }
 0x4ee   :  { %v2543_v54 = vpop.eup %2542  ;;  %2388 = vmatpush3.msra.mxu0 %v453_v53  ;;  %2395 = vmatmul.mubr.msk.f32.vlgmr.msra.gmra.mrb[20].mxu1 %vm458_vm2, %v1146_v52 }
 0x4ef   :  { %v1145_v55 = vmul.f32 %v2543_v54, %v2967_v25  ;;  %2389 = vmatprep.mubr.msk.f32.mxu0 %vm2656_vm1, %v2655_v48  ;;  %2463 = vmatprep.subr.bf16.mxu0 %v2462_v62 }
 0x4f0   :  { %2473 = vmatpush3.bf16.msra.mxu1 %v2470_v46 }
 0x4f1   :  { %2390 = vmatmul.mubr.msk.f32.vlgmr.msra.gmra.mrb[14].mxu0 %vm458_vm2, %v1145_v55  ;;  %2475 = vmatprep.subr.bf16.mxu1 %v2474_v50 }
 0x4f2   :  { %2465 = vmatpush3.bf16.msra.mxu0 %v2462_v62 }
 0x4f3   :  { %2467 = vmatprep.subr.bf16.mxu0 %v2466_v3 }
 0x4f4   :  { %2477 = vmatpush3.bf16.msra.mxu1 %v2474_v50 }
 0x4f6   :  { %2469 = vmatpush3.bf16.msra.mxu0 %v2466_v3 }
 0x55b   :  { %v1216_v56 = vpop.f32.mrb[8].mxu0 }
 0x55c   :  { %v2361_v57 = vpop.f32.mrb[9].mxu0 }
 0x560   :  { %v1289_v58 = vpop.f32.mrb[14].mxu1 }
 0x561   :  { %v2366_v59 = vpop.f32.mrb[15].mxu1 }
 0x5b8   :  { %v1435_v4 = vpop.f32.mrb[16].mxu1 }
 0x5b9   :  { %1735 = vrot.lane.b32.xlu1 %v1435_v4, %s2653_s22  ;;  %v2376_v5 = vpop.f32.mrb[17].mxu1 }
 0x5ba   :  { %v2047_v5 = vld [vmem:[%s3095_s15] sm:$0xff] }
 0x5bc   :  { %v1362_v48 = vpop.f32.mrb[10].mxu0 }
 0x5bd   :  { %v1581_v6 = vpop.f32.mrb[18].mxu1  ;;  %1733 = vrot.lane.b32.xlu0 %v1362_v48, %s2653_s22  ;;  %v2371_v7 = vpop.f32.mrb[11].mxu0  ;;  %v2048_v48 = vld [vmem:[%s3095_s15 + $0x8] sm:$0xff] }
 0x5be   :  { %1743 = vrot.lane.b32.xlu1 %v1581_v6, %s2660_s8  ;;  %v2386_v8 = vpop.f32.mrb[19].mxu1  ;;  %v2478_v6 = vpack.c.bf16 %v2048_v48, %v2047_v5  ;;  %v2049_v7 = vld [vmem:[%s3095_s15 + $0x10] sm:$0xff] }
 0x5bf   :  { %v2050_v8 = vld [vmem:[%s3095_s15 + $0x18] sm:$0xff] }
 0x5c0   :  { %v1508_v9 = vpop.f32.mrb[12].mxu0  ;;  %2479 = vmatprep.subr.bf16.mxu0 %v2478_v6 }
 0x5c1   :  { %1741 = vrot.lane.b32.xlu0 %v1508_v9, %s2660_s8  ;;  %v2381_v11 = vpop.f32.mrb[13].mxu0  ;;  %v1727_v13 = vpop.f32.mrb[20].mxu1  ;;  %v2482_v9 = vpack.c.bf16 %v2050_v8, %v2049_v7 }
 0x5c2   :  { %1751 = vrot.lane.b32.xlu1 %v1727_v13, %s2661_s3  ;;  %v2396_v14 = vpop.f32.mrb[21].mxu1  ;;  %v2051_v11 = vld [vmem:[%s3095_s15 + $0x20] sm:$0xff]  ;;  %v2052_v13 = vld [vmem:[%s3095_s15 + $0x28] sm:$0xff] }
 0x5c3   :  { %v2486_v14 = vpack.c.bf16 %v2052_v13, %v2051_v11  ;;  %v2209_v11 = vld [vmem:[%s3096_s16] ss:$0 sm:$0xff] }
 0x5c4   :  { %v1654_v15 = vpop.f32.mrb[14].mxu0 }
 0x5c5   :  { %1749 = vrot.lane.b32.xlu0 %v1654_v15, %s2661_s3  ;;  %v2391_v16 = vpop.f32.mrb[15].mxu0  ;;  %v2053_v15 = vld [vmem:[%s3095_s15 + $0x30] sm:$0xff]  ;;  %s2663_s3 = smov [#allocation8]  }
 0x5c6   :  { %v2054_v16 = vld [vmem:[%s3095_s15 + $0x38] sm:$0xff]  ;;  %s2153_s25 = sshll.u32 %s2663_s3, 4  ;;  %s2154_s25 = int_to_ptr.vmem [resolvable:$true] %s2153_s25 }
 0x5c7   :  { %s2622_s23 = scalar_lea.vmem %s2154_s25, 256  ;;  %p2627_p11 = scmp.lt.s32.totalorder %s2154_s25, %s2154_s25 }
 0x5c8   :  { %p2623_p10 = scmp.ne.s32.totalorder %s2154_s25, %s2622_s23  ;;  %p2628_p12 = scmp.lt.s32.totalorder %s2622_s23, %s2622_s23 }
 0x5ca   :  { %p2629_p13 = por %p2628_p12, %p2627_p11 }
 0x5cc   :  { %p2630_p0 = pnand %p2629_p13, %p2623_p10 }
 0x62b   :  { %v1736_v17 = vpop.permute.xlu1 %1735 }
 0x62c   :  { %v1756_v23 = vsel %vm458_vm2, %v1289_v58, %v1736_v17  ;;  %v2204_v58 = vld [vmem:[%s3091_s11] ss:$0 sm:$0xff]  ;;  %v2490_v17 = vpack.c.bf16 %v2054_v16, %v2053_v15 }
 0x62f   :  { %v1734_v18 = vpop.permute.xlu0 %1733 }
 0x630   :  { %v1744_v19 = vpop.permute.xlu1 %1743  ;;  %v1755_v21 = vsel %vm458_vm2, %v1216_v56, %v1734_v18  ;;  %v2206_v18 = vld [vmem:[%s3094_s14] ss:$0 sm:$0xff] }
 0x631   :  { %v1759_v26 = vsel %vm1757_vm3, %v1756_v23, %v1744_v19 }
 0x633   :  { %v1742_v20 = vpop.permute.xlu0 %1741 }
 0x634   :  { %v1752_v22 = vpop.permute.xlu1 %1751  ;;  %v1758_v24 = vsel %vm1757_vm3, %v1755_v21, %v1742_v20 }
 0x635   :  { %v1762_v28 = vsel %vm1760_vm4, %v1759_v26, %v1752_v22 }
 0x637   :  { %v1750_v25 = vpop.permute.xlu0 %1749 }
 0x638   :  { %v1761_v27 = vsel %vm1760_vm4, %v1758_v24, %v1750_v25 }
 0x639   :  { %2405 = vmatprep.mubr.msk.f32.mxu0 %vm102_vm0, %v1761_v27 }
 0x63a   :  { %2406 = vmatmul.mubr.msk.f32.vlgmr.msra.gmra.mrb[16].mxu0 %vm102_vm0, %v1762_v28 }
 0x63b   :  { %2481 = vmatpush3.bf16.msra.mxu0 %v2478_v6 }
 0x63c   :  { %2483 = vmatprep.subr.bf16.mxu0 %v2482_v9 }
 0x63f   :  { %2485 = vmatpush3.bf16.msra.mxu0 %v2482_v9 }
 0x640   :  { %2487 = vmatprep.subr.bf16.mxu0 %v2486_v14 }
 0x643   :  { %2489 = vmatpush3.bf16.msra.mxu0 %v2486_v14 }
 0x644   :  { %2491 = vmatprep.subr.bf16.mxu0 %v2490_v17 }
 0x647   :  { %2493 = vmatpush3.bf16.msra.mxu0 %v2490_v17 }
 0x70d   :  { %v2407_v30 = vpop.f32.mrb[16].mxu0 }
 0x70e   :  { %v1852_v31 = vadd.f32 %v2407_v30, %v2201_v29  ;;  %v1846_v32 = vpop.f32.mrb[17].mxu0 }
 0x70f   :  { %v1847_v33 = vadd.f32 %v2201_v29, %v1846_v32 }
 0x710   :  { %v3010_v34 = vadd.f32 %v1852_v31, %v2808_v1 }
 0x711   :  { %v3013_v12 = vadd.f32 %v1847_v33, %v2806_v0 }
 0x712   :  { %v1862_v10 = vsel %vm102_vm0, %v3010_v34, 0.0 }
 0x713   :  { %1863 = vadd.xlane.f32.xlu1 %v1862_v10  ;;  %v1859_v35 = vsel %vm102_vm0, %v3013_v12, 0.0 }
 0x714   :  { %1860 = vadd.xlane.f32.xlu0 %v1859_v35 }
 0x7a0   :  { %v1864_v36 = vpop.xlane.xlu1 %1863 }
 0x7a1   :  { %v1866_v37 = vmul.f32 0.03125, %v1864_v36  ;;  %v1861_v38 = vpop.xlane.xlu0 %1860 }
 0x7a2   :  { %v1865_v39 = vmul.f32 0.03125, %v1861_v38 }
 0x7a3   :  { %v1868_v40 = vsub.f32 %v3010_v34, %v1866_v37 }
 0x7a4   :  { %v1867_v1 = vsub.f32 %v3013_v12, %v1865_v39 }
 0x7a5   :  { %v1870_v42 = vmul.f32 %v1868_v40, %v1868_v40 }
 0x7a6   :  { %v1869_v41 = vmul.f32 %v1867_v1, %v1867_v1 }
 0x7a7   :  { %v1874_v43 = vsel %vm102_vm0, %v1870_v42, 0.0 }
 0x7a8   :  { %v1871_v0 = vsel %vm102_vm0, %v1869_v41, 0.0 }
 0x7a9   :  { %1872 = vadd.xlane.f32.xlu0 %v1871_v0 }
 0x7ad   :  { %1875 = vadd.xlane.f32.xlu0 %v1874_v43 }
 0x836   :  { %v1873_v51 = vpop.xlane.xlu0 %1872 }
 0x837   :  { %v1877_v52 = vmul.f32 0.03125, %v1873_v51 }
 0x839   :  { %v1879_v53 = vadd.f32 1e-05, %v1877_v52 }
 0x83a   :  { %v1876_v54 = vpop.xlane.xlu0 %1875 }
 0x83b   :  { %2544 = vrsqrt.f32 %v1879_v53  ;;  %v1878_v55 = vmul.f32 0.03125, %v1876_v54 }
 0x83d   :  { %v1880_v56 = vadd.f32 1e-05, %v1878_v55 }
 0x83f   :  { %2546 = vrsqrt.f32 %v1880_v56 }
 0x845   :  { %v2545_v57 = vpop.eup %2544 }
 0x846   :  { %v1883_v59 = vmul.f32 %v2545_v57, %v1867_v1 }
 0x848   :  { %v1891_v61 = vmul.f32 %v2204_v58, %v1883_v59 }
 0x849   :  { %v2547_v62 = vpop.eup %2546 }
 0x84a   :  { %v1884_v63 = vmul.f32 %v2547_v62, %v1868_v40  ;;  %v1899_v2 = vadd.f32 %v2205_v60, %v1891_v61  ;;  %v2662_v61 = vmov -1.0  }
 0x84c   :  { %v1892_v3 = vmul.f32 %v2204_v58, %v1884_v63  ;;  %2416 = vmatprep.mubr.msk.f32.mxu1 %vm102_vm0, %v1899_v2 }
 0x84e   :  { %v1900_v4 = vadd.f32 %v2205_v60, %v1892_v3 }
 0x850   :  { %2417 = vmatmul.mubr.msk.f32.vlgmr.msra.gmra.mrb[22].mxu1 %vm102_vm0, %v1900_v4 }
 0x923   :  { %v2418_v19 = vpop.f32.mrb[22].mxu1 }
 0x924   :  { %v1990_v20 = vadd.f32 %v2418_v19, %v2206_v18  ;;  %v1984_v21 = vpop.f32.mrb[23].mxu1 }
 0x925   :  { %v1985_v22 = vadd.f32 %v2206_v18, %v1984_v21 }
 0x926   :  { %v1996_v23 = vmul.f32 0.70710677, %v1990_v20  ;;  %v1994_v7 = vmul.f32 0.5, %v1990_v20 }
 0x927   :  { %v1995_v24 = vmul.f32 0.70710677, %v1985_v22  ;;  %v1993_v48 = vmul.f32 0.5, %v1985_v22 }
 0x928   :  { %v2002_v25 = vand.u32 2147483647, %v1996_v23  ;;  %vm1998_vm5 = vcmp.ge.f32.partialorder %v1996_v23, 0.0 }
 0x929   :  { %v2001_v26 = vand.u32 2147483647, %v1995_v24  ;;  %vm1997_vm6 = vcmp.ge.f32.partialorder %v1995_v24, 0.0  ;;  %v2000_v62 = vsel %vm1998_vm5, 1.0, %v2662_v61 }
 0x92a   :  { %v2004_v27 = vmul.f32 0.3275911, %v2002_v25  ;;  %v2030_v31 = vsub.f32 0.0, %v2002_v25  ;;  %v1999_v3 = vsel %vm1997_vm6, 1.0, %v2662_v61 }
 0x92b   :  { %v2003_v28 = vmul.f32 0.3275911, %v2001_v26  ;;  %v2029_v32 = vsub.f32 0.0, %v2001_v26 }
 0x92c   :  { %v2006_v29 = vadd.f32 1.0, %v2004_v27  ;;  %v2032_v10 = vmul.f32 %v2030_v31, %v2002_v25 }
 0x92d   :  { %v2005_v30 = vadd.f32 1.0, %v2003_v28  ;;  %v2031_v37 = vmul.f32 %v2029_v32, %v2001_v26 }
 0x92e   :  { %2548 = vrcp.f32 %v2006_v29  ;;  %v2035_v40 = vmul.f32 1.442695, %v2032_v10 }
 0x92f   :  { %2550 = vrcp.f32 %v2005_v30  ;;  %v2033_v0 = vmul.f32 1.442695, %v2031_v37 }
 0x930   :  { %2552 = vpow2.f32 %v2035_v40 }
 0x931   :  { %2554 = vpow2.f32 %v2033_v0 }
 0x938   :  { %v2549_v33 = vpop.eup %2548 }
 0x939   :  { %v2551_v35 = vpop.eup %2550  ;;  %v2012_v36 = vmul.f32 1.0614054, %v2549_v33 }
 0x93a   :  { %v2011_v38 = vmul.f32 1.0614054, %v2551_v35  ;;  %v2553_v55 = vpop.eup %2552 }
 0x93b   :  { %v2014_v39 = vadd.f32 -1.4531521, %v2012_v36  ;;  %v2555_v57 = vpop.eup %2554 }
 0x93c   :  { %v2013_v1 = vadd.f32 -1.4531521, %v2011_v38 }
 0x93d   :  { %v2016_v41 = vmul.f32 %v2549_v33, %v2014_v39 }
 0x93e   :  { %v2015_v42 = vmul.f32 %v2551_v35, %v2013_v1 }
 0x93f   :  { %v2018_v43 = vadd.f32 1.4214138, %v2016_v41 }
 0x940   :  { %v2017_v44 = vadd.f32 1.4214138, %v2015_v42 }
 0x941   :  { %v2020_v45 = vmul.f32 %v2549_v33, %v2018_v43 }
 0x942   :  { %v2019_v46 = vmul.f32 %v2551_v35, %v2017_v44 }
 0x943   :  { %v2022_v47 = vadd.f32 -0.28449672, %v2020_v45 }
 0x944   :  { %v2021_v49 = vadd.f32 -0.28449672, %v2019_v46 }
 0x945   :  { %v2024_v50 = vmul.f32 %v2549_v33, %v2022_v47 }
 0x946   :  { %v2023_v51 = vmul.f32 %v2551_v35, %v2021_v49 }
 0x947   :  { %v2026_v52 = vadd.f32 0.2548296, %v2024_v50 }
 0x948   :  { %v2025_v53 = vadd.f32 0.2548296, %v2023_v51 }
 0x949   :  { %v2028_v54 = vmul.f32 %v2549_v33, %v2026_v52 }
 0x94a   :  { %v2027_v56 = vmul.f32 %v2551_v35, %v2025_v53 }
 0x94b   :  { %v2038_v58 = vmul.f32 %v2553_v55, %v2028_v54 }
 0x94c   :  { %v2037_v59 = vmul.f32 %v2555_v57, %v2027_v56 }
 0x94d   :  { %v2040_v60 = vsub.f32 1.0, %v2038_v58 }
 0x94e   :  { %v2039_v63 = vsub.f32 1.0, %v2037_v59 }
 0x94f   :  { %v2042_v2 = vmul.f32 %v2040_v60, %v2000_v62 }
 0x950   :  { %v2041_v4 = vmul.f32 %v2039_v63, %v1999_v3 }
 0x951   :  { %v2044_v5 = vadd.f32 1.0, %v2042_v2 }
 0x952   :  { %v2043_v6 = vadd.f32 1.0, %v2041_v4 }
 0x953   :  { %v2046_v9 = vmul.f32 %v2044_v5, %v1994_v7 }
 0x954   :  { %v2045_v8 = vmul.f32 %v2043_v6, %v1993_v48 }
 0x956   :  { %2435 = vmatprep.mubr.msk.f32.mxu0 %vm2062_vm7, %v2045_v8 }
 0x957   :  { %2436 = vmatmul.mubr.msk.f32.vlgmr.msra.gmra.mrb[18].mxu0 %vm2062_vm7, %v2046_v9 }
 0xa2a   :  { %v2437_v13 = vpop.f32.mrb[18].mxu0 }
 0xa2b   :  { %v2141_v14 = vadd.f32 %v2437_v13, %v2209_v11  ;;  %v2135_v15 = vpop.f32.mrb[19].mxu0 }
 0xa2c   :  { %v2136_v16 = vadd.f32 %v2209_v11, %v2135_v15 }
 0xa2d   :  { %v2145_v17 = vadd.f32 %v2141_v14, %v3010_v34 }
 0xa2e   :  { %v2144_v18 = vadd.f32 %v2136_v16, %v3013_v12 }
 0xa2f   :  { %2147 = vst.msk [vmem:[#allocation8 + $0x8] sm:$0xff] %vm102_vm0, %v2145_v17 }
 0xa30   :  { %2146 = vst.msk [vmem:[#allocation8] sm:$0xff] %vm102_vm0, %v2144_v18 }
 0xa31   :  { %2633 = shalt.err (!%p2630_p0)
}
 0xa32   :  { %s2634_s7 = scalar_lea.hbm %s3097_s17, 256 }
 0xa33   :  { %p2635_p1 = scmp.ne.s32.totalorder %s3097_s17, %s2634_s7  ;;  %p2638_p2 = scmp.lt.u32.totalorder %s2634_s7, %s3097_s17 }
 0xa35   :  { %p2640_p3 = pnand %p2638_p2, %p2635_p1 }
 0xa37   :  { %2643 = shalt.err (!%p2640_p3)
}
 0xa38   :  { %2159 = dma.vmem_to_hbm [thread:$0]  %s2154_s25, 256, %s3097_s17, [#allocation4], %s2652_s21, %s2652_s21, %s2653_s22  }
 0xa39   :  { %2648 = dma.done.wait [#allocation4], 256  }
 0xa3a   :  { %2649 = vsyncadd [#allocation4], 4294967040 }
 0xa3b   :  { %2163 = vsyncpa [#allocation3], 1 }
 0xa3c   :  { %2164 = vsyncpa [#allocation6], 1 }
 0xa3d   :  { %2165 = vsyncpa [#allocation4], 1 }

</bundles_post_ra>
